<compile_context>
chip_gen: v6e
topology: v6e:2x2x1
jax: 0.10.0
libtpu: 0.0.40
codegen_flags: <defaults>
</compile_context>

<pallas_src>
import functools

import jax
import jax.numpy as jnp
from jax import lax
from jax.experimental import pallas as pl
from jax.experimental.pallas import tpu as pltpu

LANE = 128


def _round_up(v, m):
    return (v + m - 1) // m * m


def _conv_kernel(*refs, tile_n, in_channels, op, depthwise, add_attr,
                 use_pre_linear, use_bias):
    it = iter(refs)
    _fb_ref = next(it)                              # SMEM [n_tiles] i32 (index_maps only)
    nb_ref = next(it)                               # SMEM [n_tiles] i32: #edge tiles of this node tile
    slab_ref = next(it)                             # [TE, SLAB_W] bf16 (x_src [| edge_attr], lane-padded)
    kb_ref = next(it)                               # [TE, Kp]     bf16 (kernel_basis, lane-padded)
    dst_ref = next(it)                              # [1, TE]      i32  (edge destinations; -1 = padding)
    wp_ref = next(it) if use_pre_linear else None   # [SLAB_W, Cp] bf16
    wk_ref = next(it)                               # [Kp, Cp] or [Kp, C*Op] bf16
    b_ref = next(it) if use_bias else None          # [1, Op] f32
    out_ref = next(it)                              # [TN, Op] f32 (resident accumulator over edge axis)

    n_idx = pl.program_id(0)
    e_idx = pl.program_id(1)

    @pl.when(e_idx == 0)
    def _init():
        out_ref[...] = jnp.zeros_like(out_ref)

    # Only the first nb_ref[n_idx] edge steps carry fresh edge tiles for this node
    # tile; the remaining steps re-map to the last tile (no new DMA) and are
    # skipped here so no edge is ever counted twice.
    @pl.when(e_idx < nb_ref[n_idx])
    def _accumulate():
        slab = slab_ref[...]                        # bf16
        kb = kb_ref[...]                            # bf16
        if use_pre_linear:
            # pre_linear (bias=False): bf16 operands, f32 accumulation on the MXU.
            x_s = jnp.dot(slab, wp_ref[...], preferred_element_type=jnp.float32)
        else:
            x_s = slab.astype(jnp.float32)          # SLAB_W == Cp in this case
        if add_attr:
            x_s = x_s + kb.astype(jnp.float32)      # Kp == Cp, pads are 0

        # kernel linear (bias=False): bf16 operands, f32 accumulation.
        kern = jnp.dot(kb, wk_ref[...], preferred_element_type=jnp.float32)

        te = slab.shape[0]
        if depthwise:
            msg = x_s * kern                        # [TE, Op] (Op == Cp), f32
        else:
            # einsum('eoi,ei->eo'): wk packed per *input* channel
            # (wk[k, i*Op+o] = W[o*C+i, k]) -> unroll over the small static C with
            # lane-aligned [TE, Op] slices and VPU FMAs only.
            msg = jnp.zeros((te, op), jnp.float32)
            for i in range(in_channels):
                msg = msg + x_s[:, i:i + 1] * kern[:, i * op:(i + 1) * op]

        # scatter_add restricted to this node tile: one-hot built already
        # transposed ([TN, TE]) from the lane-dense dst row; bf16 (0/1 exact) into
        # the MXU with f32 accumulation.  Pad edges (dst = -1) and edges of other
        # node tiles never match -> shared boundary tiles are never double counted.
        dst = dst_ref[...]                          # [1, TE] int32
        row_ids = lax.broadcasted_iota(jnp.int32, (tile_n, te), 0) + n_idx * tile_n
        one_hot_t = (row_ids == dst).astype(jnp.bfloat16)   # [TN, TE]
        out_ref[...] += jnp.dot(one_hot_t, msg.astype(jnp.bfloat16),
                                preferred_element_type=jnp.float32)   # [TN, Op]

    if use_bias:
        @pl.when(e_idx == pl.num_programs(1) - 1)
        def _bias():
            out_ref[...] += b_ref[...]              # [1, Op] broadcast over node rows


def conv_forward(x, kernel_basis, fiber_kernel_basis, edge_index, edge_attr,
                 params, *, dim_size, depthwise=False, add_attr=False,
                 tile_e=1024, tile_n=256, edge_steps=None):
    """Pallas wrapper matching Conv.forward (inference).

    tile_e:     edge-tile size (multiple of 128); 1024-2048 on v7x, 512-1024 on v5e/v6e.
    tile_n:     node-tile size (multiple of 8); 256 on v6e/v7x, 128 on v5e.
    edge_steps: optional static upper bound on edge tiles per node tile; if None it
                is derived from concrete edge data (host sync, not jit-traceable).
    """
    del fiber_kernel_basis  # unused by the reference forward pass
    assert tile_e % LANE == 0 and tile_n % 8 == 0

    edge_src = edge_index[0].astype(jnp.int32)
    edge_dst = edge_index[1].astype(jnp.int32)
    E = int(edge_src.shape[0])
    assert E >= 1
    C = int(x.shape[-1])
    K = int(kernel_basis.shape[-1])
    A = int(edge_attr.shape[-1]) if edge_attr is not None else 0
    use_pre_linear = edge_attr is not None
    use_bias = params.get("bias", None) is not None
    O = C if depthwise else int(params["kernel_w"].shape[0]) // C

    cp = _round_up(C, LANE)
    kp = _round_up(K, LANE)
    op = _round_up(O, LANE)
    if depthwise:
        assert op == cp
    if add_attr:
        assert kp == cp, "add_attr requires kernel_dim == in_channels"

    e_pad = _round_up(E, tile_e)
    n_pad = _round_up(max(dim_size, 1), tile_n)
    n_tiles = n_pad // tile_n
    e_tiles = e_pad // tile_e

    # ---- sort edges by destination so each node tile's edges are contiguous ----
    order = jnp.argsort(edge_dst)
    src_s = edge_src[order]
    dst_s = edge_dst[order]
    kb_s = kernel_basis[order]
    ea_s = edge_attr[order] if use_pre_linear else None

    # Per-node-tile edge-tile ranges (scalar-prefetched into SMEM).
    lo = jnp.arange(n_tiles, dtype=jnp.int32) * tile_n
    seg_start = jnp.searchsorted(dst_s, lo, side="left").astype(jnp.int32)
    seg_end = jnp.searchsorted(dst_s, lo + tile_n, side="left").astype(jnp.int32)
    has = seg_end > seg_start
    first_blk = jnp.where(has, seg_start // tile_e, 0).astype(jnp.int32)
    nblk = jnp.where(has, (seg_end - 1) // tile_e - first_blk + 1, 0).astype(jnp.int32)
    if edge_steps is None:
        edge_steps = int(jnp.max(nblk))             # host sync on concrete edge data
    edge_steps = max(min(int(edge_steps), e_tiles), 1)

    # ---- glue: gather source features; build lane-dense bf16 edge slabs ----
    # bf16 halves the per-step edge DMA (both matmuls consume bf16 anyway).
    x_src = x[src_s].astype(jnp.bfloat16)                           # [E, C]
    if use_pre_linear:
        raw = jnp.concatenate([x_src, ea_s.astype(jnp.bfloat16)], axis=-1)
        slab_w = _round_up(C + A, LANE)
    else:
        raw = x_src
        slab_w = cp
    slab = jnp.pad(raw, ((0, e_pad - E), (0, slab_w - raw.shape[1])))
    kbp = jnp.pad(kb_s.astype(jnp.bfloat16), ((0, e_pad - E), (0, kp - K)))
    dst_row = jnp.pad(dst_s, (0, e_pad - E), constant_values=-1).reshape(1, e_pad)

    # Data-dependent edge-tile index: real tiles for the first nblk[n] steps, then
    # re-map to the last real tile (index unchanged -> the pipeline issues no DMA).
    def eblk(n, e, fb, nb):
        return fb[n] + jnp.minimum(e, jnp.maximum(nb[n] - 1, 0))

    inputs = [slab, kbp, dst_row]
    in_specs = [
        pl.BlockSpec((tile_e, slab_w), lambda n, e, fb, nb: (eblk(n, e, fb, nb), 0)),
        pl.BlockSpec((tile_e, kp), lambda n, e, fb, nb: (eblk(n, e, fb, nb), 0)),
        pl.BlockSpec((1, tile_e), lambda n, e, fb, nb: (0, eblk(n, e, fb, nb))),
    ]

    if use_pre_linear:
        wp = jnp.zeros((slab_w, cp), jnp.float32).at[:C + A, :C].set(
            params["pre_linear_w"].T.astype(jnp.float32)).astype(jnp.bfloat16)
        inputs.append(wp)
        in_specs.append(pl.BlockSpec((slab_w, cp), lambda n, e, fb, nb: (0, 0)))

    if depthwise:
        wk = jnp.zeros((kp, cp), jnp.float32).at[:K, :C].set(
            params["kernel_w"].T.astype(jnp.float32)).astype(jnp.bfloat16)
        wk_w = cp
    else:
        # Pack per *input* channel: wk[k, i*Op + o] = kernel_w[o*C + i, k].
        wk3 = params["kernel_w"].astype(jnp.float32).reshape(O, C, K)
        wk3 = jnp.transpose(wk3, (2, 1, 0))                          # [K, C, O]
        wk = jnp.zeros((kp, C, op), jnp.float32).at[:K, :, :O].set(wk3)
        wk = wk.reshape(kp, C * op).astype(jnp.bfloat16)
        wk_w = C * op
    inputs.append(wk)
    in_specs.append(pl.BlockSpec((kp, wk_w), lambda n, e, fb, nb: (0, 0)))
    # NOTE: wp/wk/bias are grid-constant; pipeline_mode=pl.Buffered(1) would shave
    #       their second VMEM buffer (left at the default for portability).

    if use_bias:
        bias = jnp.zeros((1, op), jnp.float32).at[0, :O].set(
            params["bias"].astype(jnp.float32))
        inputs.append(bias)
        in_specs.append(pl.BlockSpec((1, op), lambda n, e, fb, nb: (0, 0)))

    kernel_fn = functools.partial(
        _conv_kernel, tile_n=tile_n, in_channels=C, op=op,
        depthwise=depthwise, add_attr=add_attr,
        use_pre_linear=use_pre_linear, use_bias=use_bias)

    out = pl.pallas_call(
        kernel_fn,
        out_shape=jax.ShapeDtypeStruct((n_pad, op), jnp.float32),
        grid_spec=pltpu.PrefetchScalarGridSpec(
            num_scalar_prefetch=2,
            grid=(n_tiles, edge_steps),
            in_specs=in_specs,
            out_specs=pl.BlockSpec((tile_n, op), lambda n, e, fb, nb: (n, 0)),
        ),
        compiler_params=pltpu.CompilerParams(
            # Node tiles are independent and (edges being dst-sorted) stream
            # disjoint edge segments -> genuine megacore parallelism on v7x.
            # The edge axis is a reduction into the resident output block.
            dimension_semantics=("parallel", "arbitrary"),
            vmem_limit_bytes=48 * 1024 * 1024,
        ),
    )(first_blk, nblk, *inputs)

    return out[:dim_size, :O]


def _ref_forward(x, kernel_basis, edge_index, edge_attr, params, *,
                 dim_size, depthwise, add_attr):
    """Pure-JAX f32 reference mirroring the PyTorch forward."""
    edge_src, edge_dst = edge_index[0], edge_index[1]
    x_s = x[edge_src]
    if edge_attr is not None:
        x_s = jnp.concatenate([x_s, edge_attr], -1) @ params["pre_linear_w"].T
    if add_attr:
        x_s = x_s + kernel_basis
    kern = kernel_basis @ params["kernel_w"].T
    if depthwise:
        msg = x_s * kern
    else:
        E = x_s.shape[0]
        I = x.shape[-1]
        O = params["kernel_w"].shape[0] // I
        msg = jnp.einsum("eoi,ei->eo", kern.reshape(E, O, I), x_s)
    x1 = jnp.zeros((dim_size, msg.shape[-1]), jnp.float32).at[edge_dst].add(msg)
    if params.get("bias", None) is not None:
        x1 = x1 + params["bias"]
    return x1


if __name__ == "__main__":
    keys = jax.random.split(jax.random.PRNGKey(0), 14)

    # ---- test 1: groups=1 (dense), edge_attr present, bias, add_attr=False ----
    N_NODES, E = 100, 1000
    IN_C, OUT_C, KERNEL_DIM, EDGE_ATTR_DIM = 4, 8, 6, 3

    x = jax.random.normal(keys[0], (N_NODES, IN_C), jnp.float32)
    kernel_basis = jax.random.normal(keys[1], (E, KERNEL_DIM), jnp.float32)
    fiber_kernel_basis = jax.random.normal(keys[2], (E, KERNEL_DIM), jnp.float32)
    edge_attr = jax.random.normal(keys[3], (E, EDGE_ATTR_DIM), jnp.float32)
    edge_src = jax.random.randint(keys[4], (E,), 0, N_NODES, jnp.int32)
    edge_dst = jax.random.randint(keys[5], (E,), 0, N_NODES, jnp.int32)
    edge_dst = edge_dst.at[-1].set(N_NODES - 1)   # max(edge_dst)+1 == dim_size
    edge_index = jnp.stack([edge_src, edge_dst], axis=0)

    params = {
        "pre_linear_w": 0.1 * jax.random.normal(
            keys[6], (IN_C, IN_C + EDGE_ATTR_DIM), jnp.float32),   # Linear(in+ea -> in)
        "kernel_w": 0.1 * jax.random.normal(
            keys[7], (OUT_C * IN_C, KERNEL_DIM), jnp.float32),     # Linear(K -> O*I)
        "bias": 0.05 * jnp.arange(OUT_C, dtype=jnp.float32),
    }

    # Small tiles here to exercise multiple node tiles / edge tiles and the
    # segment clamping + skipping logic.
    out = conv_forward(x, kernel_basis, fiber_kernel_basis, edge_index,
                       edge_attr, params, dim_size=N_NODES,
                       depthwise=False, add_attr=False, tile_e=256, tile_n=64)
    out = jax.block_until_ready(out)
    ref = _ref_forward(x, kernel_basis, edge_index, edge_attr, params,
                       dim_size=N_NODES, depthwise=False, add_attr=False)
    assert out.shape == ref.shape == (N_NODES, OUT_C)
    # bf16 inputs + bf16 MXU operands (f32 accumulation) -> ~1e-3-level relative
    # differences vs the f32 reference.
    assert jnp.allclose(out, ref, atol=3e-2, rtol=3e-2), "dense conv mismatch"

    # ---- test 2: depthwise, add_attr=True, no edge_attr, no bias ----
    N2, E2, C2, K2 = 64, 300, 8, 8
    x2 = jax.random.normal(keys[8], (N2, C2), jnp.float32)
    kb2 = jax.random.normal(keys[9], (E2, K2), jnp.float32)
    src2 = jax.random.randint(keys[10], (E2,), 0, N2, jnp.int32)
    dst2 = jax.random.randint(keys[11], (E2,), 0, N2, jnp.int32)
    dst2 = dst2.at[-1].set(N2 - 1)
    ei2 = jnp.stack([src2, dst2], axis=0)
    params2 = {
        "pre_linear_w": jnp.zeros((C2, C2), jnp.float32),   # unused (edge_attr=None)
        "kernel_w": 0.1 * jax.random.normal(keys[12], (C2, K2), jnp.float32),
        "bias": None,
    }

    out2 = conv_forward(x2, kb2, None, ei2, None, params2, dim_size=N2,
                        depthwise=True, add_attr=True, tile_e=128, tile_n=32)
    out2 = jax.block_until_ready(out2)
    ref2 = _ref_forward(x2, kb2, ei2, None, params2, dim_size=N2,
                        depthwise=True, add_attr=True)
    assert out2.shape == ref2.shape == (N2, C2)
    assert jnp.allclose(out2, ref2, atol=3e-2, rtol=3e-2), "depthwise conv mismatch"

    print("KERNEL_OK")
</pallas_src>

<mosaic_0001>
module attributes {stable_mosaic.version = 11 : i64} {
  func.func @_conv_kernel(%arg0: i32, %arg1: i32, %arg2: memref<2xi32, #tpu.memory_space<smem>>, %arg3: memref<2xi32, #tpu.memory_space<smem>>, %arg4: memref<256x128xbf16, #tpu.memory_space<vmem>>, %arg5: memref<256x128xbf16, #tpu.memory_space<vmem>>, %arg6: memref<1x256xi32, #tpu.memory_space<vmem>>, %arg7: memref<128x128xbf16, #tpu.memory_space<vmem>>, %arg8: memref<128x512xbf16, #tpu.memory_space<vmem>>, %arg9: memref<1x128xf32, #tpu.memory_space<vmem>>, %arg10: memref<64x128xf32, #tpu.memory_space<vmem>>) attributes {dimension_semantics = [#tpu.dimension_semantics<parallel>, #tpu.dimension_semantics<arbitrary>], iteration_bounds = array<i64: 2, 3>, scalar_prefetch = 2 : i64, scratch_operands = 0 : i64, tpu.core_type = #tpu.core_type<tc>, window_params = [{transform_indices = @transform_0, window_bounds = array<i64: 256, 128>}, {transform_indices = @transform_1, window_bounds = array<i64: 256, 128>}, {transform_indices = @transform_2, window_bounds = array<i64: 1, 256>}, {pipeline_mode = #tpu.pipeline_mode<synchronous>, transform_indices = @transform_3, window_bounds = array<i64: 128, 128>}, {pipeline_mode = #tpu.pipeline_mode<synchronous>, transform_indices = @transform_4, window_bounds = array<i64: 128, 512>}, {pipeline_mode = #tpu.pipeline_mode<synchronous>, transform_indices = @transform_5, window_bounds = array<i64: 1, 128>}, {transform_indices = @transform_6, window_bounds = array<i64: 64, 128>}]} {
    %c0_i32 = arith.constant 0 : i32
    %0 = arith.cmpi eq, %arg1, %c0_i32 : i32
    %1 = arith.extui %0 : i1 to i32
    %c0_i32_0 = arith.constant 0 : i32
    %2 = arith.cmpi ne, %1, %c0_i32_0 : i32
    scf.if %2 {
      %cst = arith.constant 0.000000e+00 : f32
      %11 = vector.broadcast %cst : f32 to vector<64x128xf32>
      %c0 = arith.constant 0 : index
      %c0_3 = arith.constant 0 : index
      %12 = vector.load %arg10[%c0, %c0_3] : memref<64x128xf32, #tpu.memory_space<vmem>>, vector<64x128xf32>
      tpu.vector_store %arg10[%c0, %c0_3], %11 {strides = array<i32>} : memref<64x128xf32, #tpu.memory_space<vmem>>, vector<64x128xf32>,
    } else {
    }
    %3 = arith.index_cast %arg0 : i32 to index
    %4 = memref.load %arg3[%3] : memref<2xi32, #tpu.memory_space<smem>>
    %5 = arith.cmpi slt, %arg1, %4 : i32
    %6 = arith.extui %5 : i1 to i32
    %c0_i32_1 = arith.constant 0 : i32
    %7 = arith.cmpi ne, %6, %c0_i32_1 : i32
    scf.if %7 {
      %c0 = arith.constant 0 : index
      %c0_3 = arith.constant 0 : index
      %11 = vector.load %arg4[%c0, %c0_3] : memref<256x128xbf16, #tpu.memory_space<vmem>>, vector<256x128xbf16>
      %c0_4 = arith.constant 0 : index
      %c0_5 = arith.constant 0 : index
      %12 = vector.load %arg5[%c0_4, %c0_5] : memref<256x128xbf16, #tpu.memory_space<vmem>>, vector<256x128xbf16>
      %c0_6 = arith.constant 0 : index
      %c0_7 = arith.constant 0 : index
      %13 = vector.load %arg7[%c0_6, %c0_7] : memref<128x128xbf16, #tpu.memory_space<vmem>>, vector<128x128xbf16>
      %cst = arith.constant dense<0.000000e+00> : vector<256x128xf32>
      %14 = tpu.matmul %11, %13, %cst {dimension_numbers = #tpu.dot_dimension_numbers<[1], [0], [0], [1], [0, 0, 1, 1], [], []>} : vector<256x128xbf16>, vector<128x128xbf16>, vector<256x128xf32> -> vector<256x128xf32>
      %c0_8 = arith.constant 0 : index
      %c0_9 = arith.constant 0 : index
      %15 = vector.load %arg8[%c0_8, %c0_9] : memref<128x512xbf16, #tpu.memory_space<vmem>>, vector<128x512xbf16>
      %cst_10 = arith.constant dense<0.000000e+00> : vector<256x512xf32>
      %16 = tpu.matmul %12, %15, %cst_10 {dimension_numbers = #tpu.dot_dimension_numbers<[1], [0], [0], [1], [0, 0, 1, 1], [], []>} : vector<256x128xbf16>, vector<128x512xbf16>, vector<256x512xf32> -> vector<256x512xf32>
      %cst_11 = arith.constant 0.000000e+00 : f32
      %17 = vector.broadcast %cst_11 : f32 to vector<256x128xf32>
      %18 = vector.extract_strided_slice %14 {offsets = [0, 0], sizes = [256, 1], strides = [1, 1]} : vector<256x128xf32> to vector<256x1xf32>
      %19 = vector.extract_strided_slice %16 {offsets = [0, 0], sizes = [256, 128], strides = [1, 1]} : vector<256x512xf32> to vector<256x128xf32>
      %20 = vector.broadcast %18 : vector<256x1xf32> to vector<256x128xf32>
      %21 = arith.mulf %20, %19 : vector<256x128xf32>
      %22 = arith.addf %17, %21 : vector<256x128xf32>
      %23 = vector.extract_strided_slice %14 {offsets = [0, 1], sizes = [256, 1], strides = [1, 1]} : vector<256x128xf32> to vector<256x1xf32>
      %24 = vector.extract_strided_slice %16 {offsets = [0, 128], sizes = [256, 128], strides = [1, 1]} : vector<256x512xf32> to vector<256x128xf32>
      %25 = vector.broadcast %23 : vector<256x1xf32> to vector<256x128xf32>
      %26 = arith.mulf %25, %24 : vector<256x128xf32>
      %27 = arith.addf %22, %26 : vector<256x128xf32>
      %28 = vector.extract_strided_slice %14 {offsets = [0, 2], sizes = [256, 1], strides = [1, 1]} : vector<256x128xf32> to vector<256x1xf32>
      %29 = vector.extract_strided_slice %16 {offsets = [0, 256], sizes = [256, 128], strides = [1, 1]} : vector<256x512xf32> to vector<256x128xf32>
      %30 = vector.broadcast %28 : vector<256x1xf32> to vector<256x128xf32>
      %31 = arith.mulf %30, %29 : vector<256x128xf32>
      %32 = arith.addf %27, %31 : vector<256x128xf32>
      %33 = vector.extract_strided_slice %14 {offsets = [0, 3], sizes = [256, 1], strides = [1, 1]} : vector<256x128xf32> to vector<256x1xf32>
      %34 = vector.extract_strided_slice %16 {offsets = [0, 384], sizes = [256, 128], strides = [1, 1]} : vector<256x512xf32> to vector<256x128xf32>
      %35 = vector.broadcast %33 : vector<256x1xf32> to vector<256x128xf32>
      %36 = arith.mulf %35, %34 : vector<256x128xf32>
      %37 = arith.addf %32, %36 : vector<256x128xf32>
      %c0_12 = arith.constant 0 : index
      %c0_13 = arith.constant 0 : index
      %38 = vector.load %arg6[%c0_12, %c0_13] : memref<1x256xi32, #tpu.memory_space<vmem>>, vector<1x256xi32>
      %39 = tpu.iota {dimensions = array<i32: 0>} : vector<64x256xi32>
      %c64_i32 = arith.constant 64 : i32
      %40 = arith.muli %arg0, %c64_i32 : i32
      %41 = vector.broadcast %40 : i32 to vector<64x256xi32>
      %42 = arith.addi %39, %41 : vector<64x256xi32>
      %43 = vector.broadcast %38 : vector<1x256xi32> to vector<64x256xi32>
      %44 = arith.cmpi eq, %42, %43 : vector<64x256xi32>
      %45 = arith.extui %44 : vector<64x256xi1> to vector<64x256xi32>
      %46 = arith.sitofp %45 : vector<64x256xi32> to vector<64x256xf32>
      %47 = arith.truncf %46 : vector<64x256xf32> to vector<64x256xbf16>
      %c0_14 = arith.constant 0 : index
      %c0_15 = arith.constant 0 : index
      %48 = vector.load %arg10[%c0_14, %c0_15] : memref<64x128xf32, #tpu.memory_space<vmem>>, vector<64x128xf32>
      %49 = arith.truncf %37 : vector<256x128xf32> to vector<256x128xbf16>
      %cst_16 = arith.constant dense<0.000000e+00> : vector<64x128xf32>
      %50 = tpu.matmul %47, %49, %cst_16 {dimension_numbers = #tpu.dot_dimension_numbers<[1], [0], [0], [1], [0, 0, 1, 1], [], []>} : vector<64x256xbf16>, vector<256x128xbf16>, vector<64x128xf32> -> vector<64x128xf32>
      %51 = arith.addf %48, %50 : vector<64x128xf32>
      %c0_17 = arith.constant 0 : index
      %c0_18 = arith.constant 0 : index
      %52 = vector.load %arg10[%c0_17, %c0_18] : memref<64x128xf32, #tpu.memory_space<vmem>>, vector<64x128xf32>
      tpu.vector_store %arg10[%c0_17, %c0_18], %51 {strides = array<i32>} : memref<64x128xf32, #tpu.memory_space<vmem>>, vector<64x128xf32>,
    } else {
    }
    %c2_i32 = arith.constant 2 : i32
    %8 = arith.cmpi eq, %arg1, %c2_i32 : i32
    %9 = arith.extui %8 : i1 to i32
    %c0_i32_2 = arith.constant 0 : i32
    %10 = arith.cmpi ne, %9, %c0_i32_2 : i32
    scf.if %10 {
      %c0 = arith.constant 0 : index
      %c0_3 = arith.constant 0 : index
      %11 = vector.load %arg10[%c0, %c0_3] : memref<64x128xf32, #tpu.memory_space<vmem>>, vector<64x128xf32>
      %c0_4 = arith.constant 0 : index
      %c0_5 = arith.constant 0 : index
      %12 = vector.load %arg9[%c0_4, %c0_5] : memref<1x128xf32, #tpu.memory_space<vmem>>, vector<1x128xf32>
      %13 = vector.broadcast %12 : vector<1x128xf32> to vector<64x128xf32>
      %14 = arith.addf %11, %13 : vector<64x128xf32>
      %c0_6 = arith.constant 0 : index
      %c0_7 = arith.constant 0 : index
      %15 = vector.load %arg10[%c0_6, %c0_7] : memref<64x128xf32, #tpu.memory_space<vmem>>, vector<64x128xf32>
      tpu.vector_store %arg10[%c0_6, %c0_7], %14 {strides = array<i32>} : memref<64x128xf32, #tpu.memory_space<vmem>>, vector<64x128xf32>,
    } else {
    }
    return
  }
  func.func @transform_0(%arg0: i32, %arg1: i32, %arg2: memref<2xi32, #tpu.memory_space<smem>>, %arg3: memref<2xi32, #tpu.memory_space<smem>>) -> (i32, i32) {
    %0 = arith.index_cast %arg0 : i32 to index
    %1 = memref.load %arg2[%0] : memref<2xi32, #tpu.memory_space<smem>>
    %2 = arith.index_cast %arg0 : i32 to index
    %3 = memref.load %arg3[%2] : memref<2xi32, #tpu.memory_space<smem>>
    %c1_i32 = arith.constant 1 : i32
    %4 = arith.subi %3, %c1_i32 : i32
    %c0_i32 = arith.constant 0 : i32
    %5 = arith.maxsi %4, %c0_i32 : i32
    %6 = arith.minsi %arg1, %5 : i32
    %7 = arith.addi %1, %6 : i32
    %c0_i32_0 = arith.constant 0 : i32
    %c0_i32_1 = arith.constant 0 : i32
    return %7, %c0_i32_0 : i32, i32
  }
  func.func @transform_1(%arg0: i32, %arg1: i32, %arg2: memref<2xi32, #tpu.memory_space<smem>>, %arg3: memref<2xi32, #tpu.memory_space<smem>>) -> (i32, i32) {
    %0 = arith.index_cast %arg0 : i32 to index
    %1 = memref.load %arg2[%0] : memref<2xi32, #tpu.memory_space<smem>>
    %2 = arith.index_cast %arg0 : i32 to index
    %3 = memref.load %arg3[%2] : memref<2xi32, #tpu.memory_space<smem>>
    %c1_i32 = arith.constant 1 : i32
    %4 = arith.subi %3, %c1_i32 : i32
    %c0_i32 = arith.constant 0 : i32
    %5 = arith.maxsi %4, %c0_i32 : i32
    %6 = arith.minsi %arg1, %5 : i32
    %7 = arith.addi %1, %6 : i32
    %c0_i32_0 = arith.constant 0 : i32
    %c0_i32_1 = arith.constant 0 : i32
    return %7, %c0_i32_0 : i32, i32
  }
  func.func @transform_2(%arg0: i32, %arg1: i32, %arg2: memref<2xi32, #tpu.memory_space<smem>>, %arg3: memref<2xi32, #tpu.memory_space<smem>>) -> (i32, i32) {
    %0 = arith.index_cast %arg0 : i32 to index
    %1 = memref.load %arg2[%0] : memref<2xi32, #tpu.memory_space<smem>>
    %2 = arith.index_cast %arg0 : i32 to index
    %3 = memref.load %arg3[%2] : memref<2xi32, #tpu.memory_space<smem>>
    %c1_i32 = arith.constant 1 : i32
    %4 = arith.subi %3, %c1_i32 : i32
    %c0_i32 = arith.constant 0 : i32
    %5 = arith.maxsi %4, %c0_i32 : i32
    %6 = arith.minsi %arg1, %5 : i32
    %7 = arith.addi %1, %6 : i32
    %c0_i32_0 = arith.constant 0 : i32
    %c0_i32_1 = arith.constant 0 : i32
    return %c0_i32_0, %7 : i32, i32
  }
  func.func @transform_3(%arg0: i32, %arg1: i32, %arg2: memref<2xi32, #tpu.memory_space<smem>>, %arg3: memref<2xi32, #tpu.memory_space<smem>>) -> (i32, i32) {
    %c0_i32 = arith.constant 0 : i32
    %c0_i32_0 = arith.constant 0 : i32
    %c0_i32_1 = arith.constant 0 : i32
    return %c0_i32, %c0_i32_0 : i32, i32
  }
  func.func @transform_4(%arg0: i32, %arg1: i32, %arg2: memref<2xi32, #tpu.memory_space<smem>>, %arg3: memref<2xi32, #tpu.memory_space<smem>>) -> (i32, i32) {
    %c0_i32 = arith.constant 0 : i32
    %c0_i32_0 = arith.constant 0 : i32
    %c0_i32_1 = arith.constant 0 : i32
    return %c0_i32, %c0_i32_0 : i32, i32
  }
  func.func @transform_5(%arg0: i32, %arg1: i32, %arg2: memref<2xi32, #tpu.memory_space<smem>>, %arg3: memref<2xi32, #tpu.memory_space<smem>>) -> (i32, i32) {
    %c0_i32 = arith.constant 0 : i32
    %c0_i32_0 = arith.constant 0 : i32
    %c0_i32_1 = arith.constant 0 : i32
    return %c0_i32, %c0_i32_0 : i32, i32
  }
  func.func @transform_6(%arg0: i32, %arg1: i32, %arg2: memref<2xi32, #tpu.memory_space<smem>>, %arg3: memref<2xi32, #tpu.memory_space<smem>>) -> (i32, i32) {
    %c0_i32 = arith.constant 0 : i32
    %c0_i32_0 = arith.constant 0 : i32
    return %arg0, %c0_i32 : i32, i32
  }
}

</mosaic_0001>

<bundles_post_ra>
// kernel: tpu_custom_call.1
= control target key start
LH: loop header
LB: loop body
LE: loop exit
PB: predicated region body
PF: predicated region fallthrough
CT: control target
= control target key end

     0   :  { %s3764_s27 = smov [#allocation3]   ;;  %s5410_s0 = inlined_call_operand.hbm [shape: s32[2], index: 0, kind: input, shape index: {}]   ;;  %s5411_s2 = inlined_call_operand.hbm [shape: bf16[1024,128], index: 2, kind: input, shape index: {}]   ;;  %s5412_s3 = inlined_call_operand.hbm [shape: bf16[1024,128], index: 3, kind: input, shape index: {}]   ;;  %s5413_s4 = inlined_call_operand.hbm [shape: s32[1,1024], index: 4, kind: input, shape index: {}]   ;;  %s5414_s5 = inlined_call_operand.hbm [shape: bf16[128,128], index: 5, kind: input, shape index: {}]   ;;  %s5415_s6 = inlined_call_operand.hbm [shape: bf16[128,512], index: 6, kind: input, shape index: {}]   ;;  %s5416_s7 = inlined_call_operand.vmem [shape: f32[1,128], index: 7, kind: input, shape index: {}]   ;;  %s5417_s8 = inlined_call_operand.hbm [shape: f32[128,128], index: 8, kind: output, shape index: {}]   ;;  %s5418_s1 = inlined_call_operand.vmem [shape: s32[2], index: 1, kind: input, shape index: {}]  }
   0x1   :  { %5502 = sst [smem:[#allocation118_spill]] %s5411_s2  ;;  %s15_s10 = sshll.u32 %s5418_s1, 4  ;;  %s16_s10 = int_to_ptr.vmem [resolvable:$true] %s15_s10 }
   0x2   :  { %5503 = sst [smem:[#allocation119_spill]] %s5412_s3  ;;  %s3432_s11 = scalar_lea.vmem %s16_s10, 16 }
   0x3   :  { %5504 = sst [smem:[#allocation120_spill]] %s5413_s4  ;;  %p3433_p0 = scmp.ne.s32.totalorder %s16_s10, %s3432_s11 }
   0x4   :  { %5505 = sst [smem:[#allocation121_spill]] %s5414_s5  ;;  %p3437_p1 = scmp.lt.s32.totalorder %s16_s10, %s16_s10 }
   0x5   :  { %5506 = sst [smem:[#allocation122_spill]] %s5415_s6  ;;  %p3438_p2 = scmp.lt.s32.totalorder %s3432_s11, %s3432_s11 }
   0x6   :  { %5507 = sst [smem:[#allocation123_spill]] %s5416_s7 }
   0x7   :  { %5508 = sst [smem:[#allocation124_spill]] %s5417_s8  ;;  %p3439_p3 = por %p3438_p2, %p3437_p1 }
   0x8   :  { %14 = dma.hbm_to_smem %s5410_s0, 16, %s3764_s27, [#allocation2] }
   0x9   :  { %p3440_p4 = pnand %p3439_p3, %p3433_p0 }
   0xb   :  { %3443 = shalt.err (!%p3440_p4)  }
   0xc   :  { %s3765_s12 = smov [#allocation4]  }
   0xd   :  { %18 = dma.vmem_to_smem %s16_s10, 16, %s3765_s12, [#allocation2] }
   0xe   :  { %3674 = dma.done.wait [#allocation2], 32 }
   0xf   :  { %3675 = vsyncadd [#allocation2], 4294967264 }
  0x10   :  { %20 = sfence }
  0x11   :  { %21 = vsyncpa [#allocation6], 0 }
  0x12   :  { %23 = vsyncpa [#allocation6 + $0x1], 0 }
  0x13   :  { %24 = vsyncpa [#allocation9], 0 }
  0x14   :  { %26 = vsyncpa [#allocation9 + $0x1], 0 }
  0x15   :  { %27 = vsyncpa [#allocation12], 0 }
  0x16   :  { %28 = vsyncpa [#allocation7], 0 }
  0x17   :  { %30 = vsyncpa [#allocation7 + $0x1], 0  ;;  %s3835_s0 = smov 0   ;;  %s3837_s1 = smov 0  }
  0x18   :  { %s3839_s13 = smov 0   ;;  %s3841_s14 = smov 0  }
  0x19   :  { %s3843_s15 = smov 0   ;;  %s3845_s16 = smov 0  }
  0x1a   :  { %s3847_s17 = smov 0   ;;  %s3849_s18 = smov 0  }
  0x1b   :  { %s3851_s19 = smov 0   ;;  %s3853_s20 = smov 0  }
  0x1c   :  { %s3855_s21 = smov 0   ;;  %s3857_s22 = smov 0  }
  0x1d   :  { %s3859_s23 = smov 0   ;;  %s3861_s24 = smov 0  }
  0x1e   :  { %s3863_s25 = smov 0   ;;  %s3865_s26 = smov 0  }
  0x1f   :  { %s3867_s27 = smov 0  }
  0x20 LB: > { %5509 = sst [smem:[#allocation33_spill]] %s3698_s0  ;;  %s3921_s28 = sadd.s32 4294967295, %s3762_s27   ;;  %s3762_s27 = sphi %s3867_s27, %s36_s27   ;;  %s3758_s26 = sphi %s3865_s26, %s5826_s26   ;;  %s3754_s25 = sphi %s3863_s25, %s5825_s25   ;;  %s3750_s24 = sphi %s3861_s24, %s5824_s24   ;;  %s3746_s23 = sphi %s3859_s23, %s5823_s23   ;;  %s3742_s22 = sphi %s3857_s22, %s5817_s22   ;;  %s3738_s21 = sphi %s3855_s21, %s5822_s21   ;;  %s3734_s20 = sphi %s3853_s20, %s5821_s20   ;;  %s3730_s19 = sphi %s3851_s19, %s5815_s19   ;;  %s3726_s18 = sphi %s3849_s18, %s5814_s18   ;;  %s3722_s17 = sphi %s3847_s17, %s5813_s17   ;;  %s3718_s16 = sphi %s3845_s16, %s5820_s16   ;;  %s3714_s15 = sphi %s3843_s15, %s5812_s15   ;;  %s3710_s14 = sphi %s3841_s14, %s5811_s14   ;;  %s3706_s13 = sphi %s3839_s13, %s5810_s13   ;;  %s3702_s1 = sphi %s3837_s1, %s5809_s1   ;;  %s3698_s0 = sphi %s3835_s0, %s5808_s0  }
  0x21   : > { %5510 = sst [smem:[#allocation34_spill]] %s3702_s1  ;;  %s2761_s29 = sadd.s32 4294967294, %s3762_s27  }
  0x22   : > { %5511 = sst [smem:[#allocation35_spill]] %s3706_s13  ;;  %s5419_s30 = sadd.s32 1, %s3754_s25 }
  0x23   : > { %5512 = sst [smem:[#allocation36_spill]] %s3710_s14  ;;  %s48_s9 = sadd.s32 1, %s3758_s26 }
  0x24   : > { %5513 = sst [smem:[#allocation37_spill]] %s3714_s15  ;;  %p3928_p5 = scmp.ge.s32.totalorder %s5419_s30, 3 }
  0x25   : > { %5514 = sst [smem:[#allocation38_spill]] %s3718_s16  ;;  %p5442_p6 = scmp.eq.s32.totalorder %s3921_s28, 0 }
  0x26   : > { %5515 = sst [smem:[#allocation39_spill]] %s3726_s18  ;;  %s244_s11 = sadd.s32 1, %s3706_s13 }
  0x27   : > { %5516 = sst [smem:[#allocation40_spill]] %s3730_s19  ;;  %p254_p7 = scmp.ne.s32.totalorder %s3706_s13, %s3702_s1 }
  0x28   : > { %5517 = sst [smem:[#allocation41_spill]] %s3742_s22  ;;  %s5828_s9 = smov (!%p3928_p5, %s48_s9), %s3758_s26 }
  0x29   : > { %5518 = sst [smem:[#allocation42_spill]] %s3746_s23  ;;  %p255_p8 = scmp.eq.s32.totalorder %s3921_s28, 5 }
  0x2a   : > { %5519 = sst [smem:[#allocation43_spill]] %s3750_s24  ;;  %p260_p9 = scmp.ne.s32.totalorder %s3702_s1, %s3698_s0 }
  0x2b   : > { %5520 = sst [smem:[#allocation44_spill]] %s3921_s28  ;;  %p50_p10 = scmp.ge.s32.totalorder %s5828_s9, 2 }
  0x2c   : > { %p261_p11 = scmp.eq.s32.totalorder %s2761_s29, 5  ;;  %p3942_p12 = por %p255_p8, %p254_p7 }
  0x2d   : > { %p2768_p13 = scmp.ge.s32.totalorder %s3762_s27, 1  ;;  %s5830_s9 = smov (%p50_p10, %s5828_s9), 0 }
  0x2e   : > { %s5522_s12 = scalar_select %p3942_p12, 1, 0 }
  0x2f   : > { %5524 = sst [smem:[#allocation46_spill]] %s5830_s9  ;;  %p3949_p0 = por %p261_p11, %p260_p9 }
  0x30   : > { %5523 = sst [smem:[#allocation45_spill]] %s5522_s12  ;;  %p268_p1 = scmp.lt.s32.totalorder %s3762_s27, 7 }
  0x31   : > { %s5525_s30 = scalar_select %p3949_p0, 1, 0 }
  0x32   : > { %s241_s8 = ssub.s32 %s3758_s26, %s5830_s9  ;;  %p3956_p3 = pnand %p2768_p13, %p268_p1 }
  0x33   : > { %5526 = sst [smem:[#allocation47_spill]] %s5525_s30  ;;  %p242_p2 = scmp.eq.s32.totalorder %s241_s8, 0 }
  0x34   : > { %s5527_s0 = scalar_select %p3956_p3, 1, 0 }
  0x35   : > { %s3961_s29 = scalar_select %p242_p2, %s3706_s13, %s244_s11  }
  0x36   : > { %5528 = sst [smem:[#allocation48_spill]] %s5527_s0  ;;  %p3049_p4 = pneg %p3956_p3 }
  0x37   : > { %5529 = sst [smem:[#allocation49_spill]] %s3961_s29  ;;  %s3766_s12 = smov [#allocation11]  }
  0x38   : > { %s280_s7 = sshll.u32 %s3766_s12, 4  ;;  %p3967_p7 = pnand %p3049_p4, %p5442_p6  ;;  %s281_s7 = int_to_ptr.vmem [resolvable:$true] %s280_s7 }
  0x39   : > { %s3455_s8 = scalar_lea.vmem %s281_s7, 1024  ;;  %p3463_p13 = scmp.lt.s32.totalorder %s281_s7, %s281_s7 }
  0x3a   : > { %p3446_p8 = pneg %p3967_p7  ;;  %p3456_p9 = scmp.ne.s32.totalorder %s281_s7, %s3455_s8 }
  0x3b   : > { %p3464_p1 = scmp.lt.s32.totalorder %s3455_s8, %s3455_s8 }
  0x3c   : > { %p3458_p10 = pnand %p3456_p9, %p3446_p8 }
  0x3d   : > { %p3465_p2 = por %p3464_p1, %p3463_p13 }
  0x3e   : > { %p3459_p11 = pneg %p3458_p10 }
  0x40   : > { %p3466_p0 = pnand %p3465_p2, %p3459_p11 }
  0x42   : > { %3469 = shalt.err (!%p3466_p0)
}
  0x43   : > { %s5428_s11 = smov 64   ;;  %s5430_s12 = smov 4  }
  0x44   : > { %s5531_s5 = sld [smem:[#allocation121_spill]]  ;;  %p5445_p0 = scmp.lt.s32.totalorder %s3762_s27, 6 }
  0x45   : > { %s95_s13 = sld [smem:[#allocation4 + %s3758_s26]]  ;;  %p5441_p4 = scmp.eq.s32.totalorder %s3762_s27, 0 }
  0x46   : > { %p120_p9 = scmp.ne.s32.totalorder %s3730_s19, %s3726_s18  ;;  %s103_s30 = sld [smem:[#allocation4 + %s5830_s9]] }
  0x47   : > { %p126_p10 = scmp.ne.s32.totalorder %s3726_s18, %s3722_s17  ;;  %s5532_s23 = sadd.s32 1, %s3754_s25 }
  0x48   : > { %s5832_s23 = smov (%p3928_p5, %s5532_s23), 0  ;;  %s94_s1 = sld [smem:[#allocation3 + %s3758_s26]] }
  0x49   : > { %p4001_p11 = por %p126_p10, %p5442_p6  ;;  %p4008_p13 = por %p120_p9, %p5441_p4 }
  0x4a   : > { %3052 = dma.hbm_to_vmem [thread:$0]  (!%p3967_p7), %s5531_s5, 1024, %s281_s7, [#allocation12], %s5428_s11, %s5428_s11, %s5430_s12  }
  0x4b   : > { %s5533_s29 = scalar_select %p4001_p11, 1, 0 }
  0x4c   : > { %s113_s7 = sadd.s32 1, %s3730_s19  ;;  %s2764_s17 = sadd.s32 4294967295, %s95_s13 }
  0x4d   : > { %5534 = sst [smem:[#allocation50_spill]] %s5533_s29  ;;  %s341_s10 = sand.u32 1, %s3730_s19  }
  0x4e   : > { %p97_p5 = scmp.gt.s32.totalorder %s2764_s17, 0  ;;  %p4017_p1 = pnand %p5445_p0, %p4008_p13 }
  0x4f   : > { %s102_s12 = sld [smem:[#allocation3 + %s5830_s9]]  ;;  %s2765_s5 = sadd.s32 4294967295, %s103_s30 }
  0x50   : > { %s5834_s17 = smov (!%p97_p5, %s2764_s17), 0  ;;  %p105_p2 = scmp.gt.s32.totalorder %s2765_s5, 0 }
  0x51   : > { %s2776_s29 = sshll.u32 %s341_s10, 7  ;;  %p99_p9 = scmp.lt.s32.totalorder %s3754_s25, %s5834_s17 }
  0x52   : > { %s5836_s5 = smov (!%p105_p2, %s2765_s5), 0  ;;  %s3769_s0 = smov [#allocation13]  }
  0x53   : > { %s100_s13 = scalar_select %p99_p9, %s3754_s25, %s5834_s17 }
  0x54   : > { %p107_p10 = scmp.lt.s32.totalorder %s5832_s23, %s5836_s5  ;;  %s293_s4 = sshll.u32 %s3769_s0, 4  ;;  %s294_s4 = int_to_ptr.vmem [resolvable:$true] %s293_s4 }
  0x55   : > { %s101_s18 = sadd.s32 %s100_s13, %s94_s1  ;;  %s339_s15 = sand.u32 1, %s3762_s27  }
  0x56   : > { %s108_s2 = scalar_select %p107_p10, %s5832_s23, %s5836_s5 }
  0x57   : > { %s3030_s30 = scalar_select %p4008_p13, [#allocation3], [#allocation17] }
  0x58   : > { %s109_s16 = sadd.s32 %s108_s2, %s102_s12  ;;  %s343_s17 = scalar_lea.vmem [#allocation8], %s2776_s29 }
  0x59   : > { %s110_s14 = ssub.s32 %s101_s18, %s109_s16  ;;  %s358_s13 = sshll.u32 %s343_s17, 4  ;;  %s4049_s13 = int_to_ptr.vmem [resolvable:$true] %s358_s13 }
  0x5a   : > { %p111_p5 = scmp.eq.s32.totalorder %s110_s14, 0  ;;  %s3481_s5 = scalar_lea.vmem %s294_s4, 4096 }
  0x5b   : > { %s3031_s10 = scalar_select %p4008_p13, %s3758_s26, 0 }
  0x5c   : > { %s4033_s3 = scalar_select %p111_p5, %s3730_s19, %s113_s7  }
  0x5d   : > { %s5838_s10 = smov (!%p5445_p0, %s3031_s10), 0  ;;  %p3482_p2 = scmp.ne.s32.totalorder %s294_s4, %s3481_s5 }
  0x5e   : > { %5537 = sst [smem:[#allocation51_spill]] %s4033_s3  ;;  %p3489_p4 = scmp.lt.s32.totalorder %s294_s4, %s294_s4 }
  0x5f   : > { %s3032_s1 = scalar_select %p4008_p13, [#allocation4], [#allocation18] }
  0x60   : > { %p3484_p9 = pnand %p3482_p2, %p3446_p8  ;;  %p3490_p6 = scmp.lt.s32.totalorder %s3481_s5, %s3481_s5 }
  0x61   : > { %s5840_s1 = smov (!%p5445_p0, %s3032_s1), [#allocation24] }
  0x62   : > { %p3485_p10 = pneg %p3484_p9  ;;  %p3491_p12 = por %p3490_p6, %p3489_p4 }
  0x64   : > { %p3492_p11 = pnand %p3491_p12, %p3485_p10 }
  0x66   : > { %3495 = shalt.err (!%p3492_p11)
}
  0x67   : > { %s3770_s2 = smov 256   ;;  %s3771_s0 = smov 16  }
  0x68   : > { %s5538_s6 = sld [smem:[#allocation122_spill]]  ;;  %s5842_s30 = smov (!%p5445_p0, %s3030_s30), [#allocation23] }
  0x69   : > { %s345_s18 = sld [smem:[%s5840_s1 + %s5838_s10]]  ;;  %p84_p6 = scmp.ne.s32.totalorder %s3738_s21, %s3734_s20 }
  0x6a   : > { %s53_s12 = sld [smem:[#allocation4 + %s3758_s26]]  ;;  %p5539_p8 = scmp.eq.s32.totalorder %s3921_s28, 0 }
  0x6b   : > { %s4057_s7 = sld [smem:[#allocation4 + %s5830_s9]]  ;;  %p3498_p10 = pneg %p4017_p1 }
  0x6c   : > { %s344_s24 = sld [smem:[%s5842_s30 + %s5838_s10]] }
  0x6d   : > { %s4066_s8 = sld [smem:[#allocation3 + %s3758_s26]] }
  0x6e   : > { %3055 = dma.hbm_to_vmem [thread:$0]  (!%p3967_p7), %s5538_s6, 4096, %s294_s4, [#allocation12], %s3770_s2, %s3770_s2, %s3771_s0  }
  0x6f   : > { %s2777_s29 = sadd.s32 4294967295, %s345_s18  ;;  %p4061_p7 = por %p5539_p8, %p84_p6 }
  0x70   : > { %p347_p12 = scmp.gt.s32.totalorder %s2777_s29, 0  ;;  %s2762_s1 = sadd.s32 4294967295, %s53_s12 }
  0x71   : > { %s5540_s4 = scalar_select %p4061_p7, 1, 0 }
  0x72   : > { %s5844_s29 = smov (!%p347_p12, %s2777_s29), 0  ;;  %p55_p11 = scmp.gt.s32.totalorder %s2762_s1, 0 }
  0x73   : > { %p349_p4 = scmp.lt.s32.totalorder %s3754_s25, %s5844_s29  ;;  %s5446_s20 = sadd.s32 4294967295, %s4057_s7 }
  0x74   : > { %s5846_s1 = smov (!%p55_p11, %s2762_s1), 0  ;;  %p4077_p5 = scmp.gt.s32.totalorder %s5446_s20, 0 }
  0x75   : > { %s350_s17 = scalar_select %p349_p4, %s3754_s25, %s5844_s29 }
  0x76   : > { %s5541_s10 = scalar_select %p4077_p5, 1, 0 }
  0x77   : > { %s351_s30 = sadd.s32 %s350_s17, %s344_s24  ;;  %s5542_s14 = sld [smem:[#allocation119_spill]] }
  0x78   : > { %s2906_s5 = sshll.u32 %s351_s30, 11  ;;  %s4089_s18 = sld [smem:[#allocation3 + %s5830_s9]] }
  0x79   : > { %s4093_s29 = scalar_lea.sflag [#allocation9], %s339_s15 }
  0x7d   : > { %s5543_s12 = smov %s5542_s14  ;;  %s4086_s16 = scalar_lea.hbm %s5542_s14, %s2906_s5 }
  0x7e   : > { %s3496_s24 = scalar_lea.hbm %s4086_s16, 2048  ;;  %s3501_s2 = scalar_lea.hbm %s5543_s12, 8192 }
  0x7f   : > { %p3497_p9 = scmp.ne.s32.totalorder %s4086_s16, %s3496_s24  ;;  %p3502_p8 = scmp.lt.s32.totalorder %s4086_s16, %s5543_s12 }
  0x80   : > { %p3503_p4 = scmp.lt.s32.totalorder %s3501_s2, %s3496_s24 }
  0x81   : > { %p3499_p6 = pnand %p3498_p10, %p3497_p9 }
  0x82   : > { %p3504_p11 = por %p3503_p4, %p3502_p8 }
  0x83   : > { %p3500_p12 = pneg %p3499_p6 }
  0x85   : > { %p3505_p0 = pnand %p3504_p11, %p3500_p12 }
  0x87   : > { %3508 = shalt.err (!%p3505_p0)
}
  0x88   : > { %s3509_s15 = scalar_lea.vmem %s4049_s13, 2048  ;;  %s3772_s14 = smov [#allocation8]  }
  0x89   : > { %p3510_p13 = scmp.ne.s32.totalorder %s4049_s13, %s3509_s15  ;;  %s3514_s20 = sshll.u32 %s3772_s14, 4  ;;  %s3515_s20 = int_to_ptr.vmem [resolvable:$false] %s3514_s20 }
  0x8a   : > { %s3516_s17 = scalar_lea.vmem %s3515_s20, 4096  ;;  %p3517_p6 = scmp.lt.s32.totalorder %s4049_s13, %s3515_s20 }
  0x8b   : > { %p3512_p2 = pnand %p3510_p13, %p3498_p10  ;;  %p3518_p7 = scmp.lt.s32.totalorder %s3516_s17, %s3509_s15 }
  0x8d   : > { %p3513_p9 = pneg %p3512_p2  ;;  %p3519_p3 = por %p3518_p7, %p3517_p6 }
  0x8f   : > { %p3520_p5 = pnand %p3519_p3, %p3513_p9 }
  0x91   : > { %3523 = shalt.err (!%p3520_p5)
}
  0x92   : > { %s5544_s24 = smov 4   ;;  %s5545_s30 = smov 64  }
  0x93   : > { %3070 = dma.hbm_to_vmem [thread:$0]  (!%p4017_p1), %s4086_s16, 2048, %s4049_s13, %s4093_s29, %s5545_s30, %s5545_s30, %s5544_s24  }
  0x94   : > { %p5546_p3 = scmp.lt.s32.totalorder %s3754_s25, %s5846_s1  ;;  %s5547_s20 = sadd.s32 4294967295, %s4057_s7 }
  0x95   : > { %p5548_p0 = scmp.ne.s32.totalorder %s5541_s10, 0  ;;  %p5549_p7 = scmp.ne.s32.totalorder %s3742_s22, %s3738_s21 }
  0x96   : > { %s58_s11 = scalar_select %p5546_p3, %s3754_s25, %s5846_s1 }
  0x97   : > { %s5848_s20 = smov (!%p5548_p0, %s5547_s20), 0  ;;  %p5550_p13 = scmp.eq.s32.totalorder %s3762_s27, 0 }
  0x98   : > { %p65_p2 = scmp.lt.s32.totalorder %s5832_s23, %s5848_s20  ;;  %s71_s13 = sadd.s32 1, %s3742_s22 }
  0x99   : > { %p4131_p5 = por %p5550_p13, %p5549_p7  ;;  %s59_s16 = sadd.s32 %s58_s11, %s4066_s8 }
  0x9a   : > { %s5449_s1 = sand.u32 1, %s3742_s22   ;;  %p5552_p1 = scmp.lt.s32.totalorder %s3762_s27, 6 }
  0x9b   : > { %s66_s7 = scalar_select %p65_p2, %s5832_s23, %s5848_s20 }
  0x9c   : > { %s3026_s10 = scalar_select %p4131_p5, %s3758_s26, 0 }
  0x9d   : > { %s67_s5 = sadd.s32 %s66_s7, %s4089_s18  ;;  %s5553_s0 = sld [smem:[#allocation36_spill]] }
  0x9e   : > { %s5554_s15 = sld [smem:[#allocation37_spill]]  ;;  %p4148_p10 = pnand %p5552_p1, %p4131_p5 }
  0x9f   : > { %s68_s17 = ssub.s32 %s59_s16, %s67_s5  ;;  %s2772_s6 = sshll.u32 %s5449_s1, 7 }
  0xa0   : > { %p69_p12 = scmp.eq.s32.totalorder %s68_s17, 0  ;;  %p5557_p8 = pmov %p5552_p1 }
  0xa1   : > { %s3025_s8 = scalar_select %p4131_p5, [#allocation3], [#allocation15] }
  0xa2   : > { %s4157_s11 = scalar_select %p69_p12, %s3742_s22, %s71_s13  }
  0xa3   : > { %s5850_s10 = smov (!%p5557_p8, %s3026_s10), 0  ;;  %p5558_p4 = pmov %p5552_p1 }
  0xa4   : > { %5556 = sst [smem:[#allocation52_spill]] %s4157_s11  ;;  %p5559_p11 = pmov %p5552_p1 }
  0xa5   : > { %s3027_s18 = scalar_select %p4131_p5, [#allocation4], [#allocation16] }
  0xa6   : > { %s5854_s8 = smov (!%p5559_p11, %s3025_s8), [#allocation21]  ;;  %s5560_s20 = sld [smem:[#allocation38_spill]] }
  0xa7   : > { %s5852_s18 = smov (!%p5558_p4, %s3027_s18), [#allocation22]  ;;  %s314_s7 = scalar_lea.vmem [#allocation5], %s2772_s6 }
  0xa8   : > { %s316_s16 = sld [smem:[%s5852_s18 + %s5850_s10]]  ;;  %s329_s5 = sshll.u32 %s314_s7, 4  ;;  %s4173_s5 = int_to_ptr.vmem [resolvable:$true] %s329_s5 }
  0xa9   : > { %s137_s17 = sld [smem:[#allocation4 + %s3758_s26]]  ;;  %p168_p9 = scmp.ne.s32.totalorder %s5554_s15, %s5553_s0 }
  0xaa   : > { %s4169_s1 = sld [smem:[#allocation4 + %s5830_s9]]  ;;  %p5561_p6 = scmp.eq.s32.totalorder %s3921_s28, 0 }
  0xab   : > { %s315_s2 = sld [smem:[%s5854_s8 + %s5850_s10]]  ;;  %p5564_p2 = scmp.eq.s32.totalorder %s3762_s27, 0 }
  0xac   : > { %p4177_p3 = por %p168_p9, %p5561_p6  ;;  %s4182_s6 = sld [smem:[#allocation3 + %s3758_s26]] }
  0xad   : > { %p162_p13 = scmp.ne.s32.totalorder %s5560_s20, %s5554_s15  ;;  %s4192_s8 = sld [smem:[#allocation3 + %s5830_s9]] }
  0xae   : > { %s2773_s13 = sadd.s32 4294967295, %s316_s16  ;;  %s5567_s19 = sld [smem:[#allocation118_spill]] }
  0xaf   : > { %s5562_s12 = scalar_select %p4177_p3, 1, 0 }
  0xb0   : > { %p318_p0 = scmp.gt.s32.totalorder %s2773_s13, 0  ;;  %s2766_s18 = sadd.s32 4294967295, %s137_s17 }
  0xb1   : > { %5563 = sst [smem:[#allocation36_spill]] %s5562_s12  ;;  %p139_p7 = scmp.gt.s32.totalorder %s2766_s18, 0 }
  0xb2   : > { %s5856_s13 = smov (!%p318_p0, %s2773_s13), 0  ;;  %s5455_s10 = sadd.s32 4294967295, %s4169_s1 }
  0xb3   : > { %p320_p5 = scmp.lt.s32.totalorder %s3754_s25, %s5856_s13  ;;  %s5858_s18 = smov (!%p139_p7, %s2766_s18), 0 }
  0xb4   : > { %p4196_p1 = por %p162_p13, %p5564_p2  ;;  %p4204_p8 = scmp.gt.s32.totalorder %s5455_s10, 0 }
  0xb5   : > { %s321_s0 = scalar_select %p320_p5, %s3754_s25, %s5856_s13 }
  0xb6   : > { %s5565_s16 = scalar_select %p4196_p1, 1, 0 }
  0xb7   : > { %s322_s7 = sadd.s32 %s321_s0, %s315_s2  ;;  %s5568_s12 = smov %s5567_s19 }
  0xb8   : > { %s2905_s17 = sshll.u32 %s322_s7, 11  ;;  %p4217_p11 = pnand %p5558_p4, %p4196_p1 }
  0xb9   : > { %s5566_s15 = scalar_select %p4204_p8, 1, 0 }
  0xba   : > { %s4211_s13 = scalar_lea.hbm %s5567_s19, %s2905_s17  ;;  %s5570_s2 = sand.u32 1, %s3742_s22  }
  0xbb   : > { %s5569_s9 = scalar_select %p4217_p11, 1, 0 }
  0xbc   : > { %s4223_s0 = scalar_lea.sflag [#allocation6], %s5570_s2  ;;  %s3524_s7 = scalar_lea.hbm %s4211_s13, 2048 }
  0xbd   : > { %p3525_p9 = scmp.ne.s32.totalorder %s4211_s13, %s3524_s7  ;;  %p3526_p6 = pneg %p4148_p10 }
  0xbe   : > { %s3529_s11 = scalar_lea.hbm %s5568_s12, 8192  ;;  %p3530_p13 = scmp.lt.s32.totalorder %s4211_s13, %s5568_s12 }
  0xbf   : > { %p3527_p0 = pnand %p3526_p6, %p3525_p9  ;;  %p3531_p5 = scmp.lt.s32.totalorder %s3529_s11, %s3524_s7 }
  0xc1   : > { %p3528_p7 = pneg %p3527_p0  ;;  %p3532_p2 = por %p3531_p5, %p3530_p13 }
  0xc3   : > { %p3533_p4 = pnand %p3532_p2, %p3528_p7 }
  0xc5   : > { %3536 = shalt.err (!%p3533_p4)
}
  0xc6   : > { %s3537_s2 = scalar_lea.vmem %s4173_s5, 2048  ;;  %s3773_s22 = smov [#allocation5]  }
  0xc7   : > { %p3538_p12 = scmp.ne.s32.totalorder %s4173_s5, %s3537_s2  ;;  %s3542_s28 = sshll.u32 %s3773_s22, 4  ;;  %s3543_s28 = int_to_ptr.vmem [resolvable:$false] %s3542_s28 }
  0xc8   : > { %s3544_s3 = scalar_lea.vmem %s3543_s28, 4096  ;;  %p3545_p0 = scmp.lt.s32.totalorder %s4173_s5, %s3543_s28 }
  0xc9   : > { %p3540_p3 = pnand %p3538_p12, %p3526_p6  ;;  %p3546_p11 = scmp.lt.s32.totalorder %s3544_s3, %s3537_s2 }
  0xcb   : > { %p3541_p9 = pneg %p3540_p3  ;;  %p3547_p1 = por %p3546_p11, %p3545_p0 }
  0xcd   : > { %p3548_p8 = pnand %p3547_p1, %p3541_p9 }
  0xcf   : > { %3551 = shalt.err (!%p3548_p8)
}
  0xd0   : > { %3063 = dma.hbm_to_vmem [thread:$0]  (!%p4148_p10), %s4211_s13, 2048, %s4173_s5, %s4223_s0, %s5545_s30, %s5545_s30, %s5544_s24  }
  0xd1   : > { %p5571_p3 = scmp.lt.s32.totalorder %s3754_s25, %s5858_s18  ;;  %s5572_s28 = sadd.s32 4294967295, %s4169_s1 }
  0xd2   : > { %p5573_p1 = scmp.ne.s32.totalorder %s5566_s15, 0  ;;  %p5574_p8 = scmp.ne.s32.totalorder %s5565_s16, 0 }
  0xd3   : > { %s142_s22 = scalar_select %p5571_p3, %s3754_s25, %s5858_s18 }
  0xd4   : > { %s5860_s28 = smov (!%p5573_p1, %s5572_s28), 0  ;;  %s155_s17 = sadd.s32 1, %s5560_s20 }
  0xd5   : > { %p149_p12 = scmp.lt.s32.totalorder %s5832_s23, %s5860_s28  ;;  %s143_s14 = sadd.s32 %s142_s22, %s4182_s6 }
  0xd6   : > { %s3036_s7 = scalar_select %p5574_p8, %s3758_s26, 0 }
  0xd7   : > { %s150_s10 = scalar_select %p149_p12, %s5832_s23, %s5860_s28 }
  0xd8   : > { %p5575_p10 = scmp.lt.s32.totalorder %s3762_s27, 6  ;;  %s370_s5 = sand.u32 1, %s5560_s20  }
  0xd9   : > { %s151_s19 = sadd.s32 %s150_s10, %s4192_s8  ;;  %s2780_s6 = sshll.u32 %s370_s5, 1 }
  0xda   : > { %s152_s11 = ssub.s32 %s143_s14, %s151_s19  ;;  %s5862_s7 = smov (!%p5575_p10, %s3036_s7), 0 }
  0xdb   : > { %p153_p11 = scmp.eq.s32.totalorder %s152_s11, 0  ;;  %p5576_p6 = pmov %p5575_p10 }
  0xdc   : > { %s3037_s24 = scalar_select %p5574_p8, [#allocation4], [#allocation20] }
  0xdd   : > { %s4265_s2 = scalar_select %p153_p11, %s5560_s20, %s155_s17  }
  0xde   : > { %s5864_s24 = smov (!%p5576_p6, %s3037_s24), [#allocation26]  ;;  %p5577_p7 = pmov %p5576_p6 }
  0xdf   : > { %s3035_s30 = scalar_select %p5574_p8, [#allocation3], [#allocation19] }
  0xe0   : > { %s374_s1 = sld [smem:[%s5864_s24 + %s5862_s7]]  ;;  %s372_s15 = scalar_lea.vmem [#allocation10], %s2780_s6 }
  0xe1   : > { %s5866_s30 = smov (!%p5577_p7, %s3035_s30), [#allocation25]  ;;  %s388_s13 = sshll.u32 %s372_s15, 4  ;;  %s389_s13 = int_to_ptr.vmem [resolvable:$true] %s388_s13 }
  0xe2   : > { %s373_s8 = sld [smem:[%s5866_s30 + %s5862_s7]]  ;;  %p5580_p4 = scmp.ne.s32.totalorder %s5569_s9, 0 }
  0xe3   : > { %s5578_s14 = sld [smem:[#allocation120_spill]] }
  0xe4   : > { %p3554_p9 = pneg %p5580_p4 }
  0xe6   : > { %s2781_s18 = sadd.s32 4294967295, %s374_s1 }
  0xe7   : > { %p376_p13 = scmp.gt.s32.totalorder %s2781_s18, 0 }
  0xe9   : > { %s5868_s18 = smov (!%p376_p13, %s2781_s18), 0  ;;  %s5579_s10 = smov %s5578_s14 }
  0xea   : > { %p378_p5 = scmp.lt.s32.totalorder %s3754_s25, %s5868_s18  ;;  %s3557_s17 = scalar_lea.hbm %s5579_s10, 128 }
  0xec   : > { %s379_s0 = scalar_select %p378_p5, %s3754_s25, %s5868_s18 }
  0xee   : > { %s380_s3 = sadd.s32 %s379_s0, %s373_s8 }
  0xef   : > { %s2907_s22 = sshll.u32 %s380_s3, 5 }
  0xf0   : > { %s386_s19 = scalar_lea.hbm %s5578_s14, %s2907_s22 }
  0xf1   : > { %s3552_s20 = scalar_lea.hbm %s386_s19, 32  ;;  %p3558_p1 = scmp.lt.s32.totalorder %s386_s19, %s5579_s10 }
  0xf2   : > { %p3553_p2 = scmp.ne.s32.totalorder %s386_s19, %s3552_s20  ;;  %p3559_p12 = scmp.lt.s32.totalorder %s3557_s17, %s3552_s20 }
  0xf4   : > { %p3555_p0 = pnand %p3554_p9, %p3553_p2  ;;  %p3560_p8 = por %p3559_p12, %p3558_p1 }
  0xf6   : > { %p3556_p3 = pneg %p3555_p0 }
  0xf8   : > { %p3561_p11 = pnand %p3560_p8, %p3556_p3 }
  0xfa   : > { %3564 = shalt.err (!%p3561_p11)
}
  0xfb   : > { %s3565_s1 = scalar_lea.vmem %s389_s13, 32  ;;  %s3774_s5 = smov [#allocation10]  }
  0xfc   : > { %p3566_p10 = scmp.ne.s32.totalorder %s389_s13, %s3565_s1  ;;  %s3570_s6 = sshll.u32 %s3774_s5, 4  ;;  %s3571_s6 = int_to_ptr.vmem [resolvable:$false] %s3570_s6 }
  0xfd   : > { %s3572_s18 = scalar_lea.vmem %s3571_s6, 64  ;;  %p3573_p13 = scmp.lt.s32.totalorder %s389_s13, %s3571_s6 }
  0xfe   : > { %p3568_p6 = pnand %p3566_p10, %p3554_p9  ;;  %p3574_p5 = scmp.lt.s32.totalorder %s3572_s18, %s3565_s1 }
 0x100   : > { %p3569_p7 = pneg %p3568_p6  ;;  %p3575_p2 = por %p3574_p5, %p3573_p13 }
 0x102   : > { %p3576_p0 = pnand %p3575_p2, %p3569_p7 }
 0x104   : > { %3579 = shalt.err (!%p3576_p0)
}
 0x105   : > { %3077 = dma.hbm_to_vmem [thread:$0]  (!%p5580_p4), %s386_s19, 32, %s389_s13, %s4093_s29  }
 0x106   : > { %s5581_s8 = sld [smem:[#allocation48_spill]] }
 0x10c   : > { %p5582_p3 = scmp.ne.s32.totalorder %s5581_s8, 0 }
 0x10d   : > { %s399_s15 = sand.u32 (!%p5582_p3), 1, %s3738_s21   ;;  %p5583_p9 = scmp.ne.s32.totalorder (!%p5582_p3), %s5540_s4, 0 }
 0x10e   : > { %397 = sbr.rel (%p5582_p3) target bundleno = 1336 (0x538), region = 44  ;;  %s2785_s0 = sshll.u32 (!%p5582_p3), %s399_s15, 7 }
 0x10f   : > { %s400_s3 = scalar_lea.sflag (!%p5582_p3), [#allocation6], %s399_s15  ;;  %s4297_s22 = scalar_lea.vmem (!%p5582_p3), [#allocation5], %s2785_s0 }
 0x113   : > { %3677 = dma.done.wait (%p5583_p9), %s400_s3, 2048  }
 0x114   : > { %3679 = vsyncadd (%p5583_p9), %s400_s3, 4294965248  ;;  %s5584_s28 = sld [smem:[#allocation44_spill]] }
 0x115   : > { %s5585_s16 = sld [smem:[#allocation39_spill]] }
 0x116   : > { %s5586_s9 = sld [smem:[#allocation50_spill]] }
 0x11a   : > { %s408_s14 = sand.u32 1, %s5584_s28  }
 0x11b   : > { %s410_s29 = sand.u32 1, %s5585_s16   ;;  %s409_s19 = scalar_lea.sflag [#allocation9], %s408_s14 }
 0x11c   : > { %s2786_s13 = sshll.u32 %s410_s29, 7  ;;  %p5587_p4 = scmp.ne.s32.totalorder %s5586_s9, 0 }
 0x11d   : > { %s4305_s20 = scalar_lea.vmem [#allocation8], %s2786_s13 }
 0x11e   : > { %3681 = dma.done.wait (%p5587_p4), %s409_s19, 2048  }
 0x11f   : > { %3683 = vsyncadd (%p5587_p4), %s409_s19, 4294965248  ;;  %s5588_s7 = sld [smem:[#allocation37_spill]] }
 0x120   : > { %s5589_s11 = sld [smem:[#allocation36_spill]] }
 0x125   : > { %s419_s17 = sand.u32 1, %s5588_s7  }
 0x126   : > { %s4312_s24 = sshll.u32 %s419_s17, 1  ;;  %p5590_p1 = scmp.ne.s32.totalorder %s5589_s11, 0 }
 0x127   : > { %s421_s4 = scalar_lea.vmem [#allocation10], %s4312_s24 }
 0x128   : > { %3685 = dma.done.wait (%p5590_p1), %s409_s19, 32  }
 0x129   : > { %3687 = vsyncadd (%p5590_p1), %s409_s19, 4294967264  ;;  %p5591_p12 = scmp.eq.s32.totalorder %s5584_s28, 0 }
 0x12b   : > { %3689 = dma.done.wait (%p5591_p12), [#allocation12], 5120   ;;  %p5592_p8 = pmov %p5591_p12 }
 0x12c   : > { %s5593_s30 = sld [smem:[#allocation34_spill]] }
 0x12d   : > { %3691 = vsyncadd (%p5592_p8), [#allocation12], 4294962176  ;;  %s5594_s18 = sld [smem:[#allocation42_spill]] }
 0x132   : > { %s465_s1 = sand.u32 1, %s5593_s30  }
 0x133   : > { %s2790_s5 = sshll.u32 %s465_s1, 6  ;;  %p2791_p11 = scmp.ne.s32.totalorder %s5594_s18, 0 }
 0x134   : > { %s4326_s6 = scalar_lea.vmem [#allocation14], %s2790_s5 }
 0x135   : > { %500 = sbr.rel (%p2791_p11) target bundleno = 319 (0x13f), region = 68 }
 0x13a   : > { %v3775_v0 = vmov 0.0  }
 0x13b   : > { %501 = vst [vmem:[%s4326_s6] sm:$0xff] %v3775_v0  ;;  %502 = vst [vmem:[%s4326_s6 + $0x8] sm:$0xff] %v3775_v0 }
 0x13c   : > { %503 = vst [vmem:[%s4326_s6 + $0x10] sm:$0xff] %v3775_v0  ;;  %504 = vst [vmem:[%s4326_s6 + $0x18] sm:$0xff] %v3775_v0 }
 0x13d   : > { %505 = vst [vmem:[%s4326_s6 + $0x20] sm:$0xff] %v3775_v0  ;;  %506 = vst [vmem:[%s4326_s6 + $0x28] sm:$0xff] %v3775_v0 }
 0x13e   : > { %507 = vst [vmem:[%s4326_s6 + $0x30] sm:$0xff] %v3775_v0  ;;  %508 = vst [vmem:[%s4326_s6 + $0x38] sm:$0xff] %v3775_v0 }
 0x13f PF: > { %s5595_s8 = sld [smem:[#allocation43_spill]] }
 0x140   : > { %s5596_s0 = sld [smem:[#allocation42_spill]] }
 0x145   : > { %s509_s15 = sld [smem:[#allocation4 + %s5595_s8]] }
 0x14b   : > { %p2792_p10 = scmp.ge.s32.totalorder %s5596_s0, %s509_s15 }
 0x14d   : > { %513 = sbr.rel (%p2792_p10) target bundleno = 1288 (0x508), region = 72 }
 0x152   : > { %v3336_v1 = vld [vmem:[#allocation11 + $0x38] sm:$0xff]   ;;  %v3337_v2 = vld [vmem:[#allocation11 + $0x30] sm:$0xff]   ;;  %v5463_v3 = vmov 0   ;;  %v3338_v4 = vld [vmem:[#allocation11 + $0x28] sm:$0xff]   ;;  %s5705_s3 = sld [smem:[#allocation43_spill]] }
 0x153   : > { %1219 = vmatprep.mubr.bf16.mxu1 %v5463_v3  ;;  %3240 = vset.pattern.permute.xlu1 %v5463_v3  ;;  %v3339_v5 = vld [vmem:[#allocation11 + $0x20] sm:$0xff]   ;;  %v3340_v7 = vld [vmem:[#allocation11 + $0x18] sm:$0xff]   ;;  %v3341_v8 = vld [vmem:[#allocation11 + $0x10] sm:$0xff]  }
 0x154   : > { %2973 = vmatprep.subr.bf16.mxu0 %v3336_v1  ;;  %3243 = vset.pattern.permute.xlu0 %v5463_v3  ;;  %v3344_v6 = vld [vmem:[%s4297_s22] sm:$0xff]   ;;  %v3352_v9 = vld [vmem:[#allocation13 + $0xe4] ss:$16 sps:$4 sm:$0xff]   ;;  %v3342_v13 = vld [vmem:[#allocation11 + $0x8] sm:$0xff]  }
 0x155   : > { %2974 = vmatpush3.bf16.msra.mxu0 %v3336_v1  ;;  %2989 = vmatprep.mubr.bf16.mxu0 %v3344_v6  ;;  %v3354_v10 = vld [vmem:[#allocation13 + $0xe0] ss:$16 sps:$4 sm:$0xff]   ;;  %v3355_v11 = vld [vmem:[#allocation13 + $0xc4] ss:$16 sps:$4 sm:$0xff]   ;;  %v3365_v18 = vld [vmem:[#allocation13 + $0xec] ss:$16 sps:$4 sm:$0xff]  }
 0x156   : > { %2975 = vmatprep.subr.bf16.mxu0 %v3337_v2  ;;  %1187 = vmatprep.subr.bf16.mxu1 %v3352_v9  ;;  %v3357_v12 = vld [vmem:[#allocation13 + $0xc0] ss:$16 sps:$4 sm:$0xff]   ;;  %v3358_v14 = vld [vmem:[#allocation13 + $0xa4] ss:$16 sps:$4 sm:$0xff]   ;;  %v3363_v23 = vld [vmem:[#allocation13 + $0xe8] ss:$16 sps:$4 sm:$0xff]  }
 0x157   : > { %1188 = vmatpush1.bf16.msra.mxu1 %v3354_v10  ;;  %v3361_v15 = vld [vmem:[#allocation13 + $0xa0] ss:$16 sps:$4 sm:$0xff]   ;;  %v3366_v17 = vld [vmem:[#allocation13 + $0x84] ss:$16 sps:$4 sm:$0xff]   ;;  %v3371_v24 = vld [vmem:[#allocation13 + $0xcc] ss:$16 sps:$4 sm:$0xff]  }
 0x158   : > { %1189 = vmatprep.subr.bf16.mxu1 %v3355_v11  ;;  %v3343_v16 = vld [vmem:[#allocation11] sm:$0xff]   ;;  %v3346_v22 = vld [vmem:[%s4297_s22 + $0x10] sm:$0xff]   ;;  %v3369_v27 = vld [vmem:[#allocation13 + $0xc8] ss:$16 sps:$4 sm:$0xff]   ;;  %v5467_v10 = vmov 1  }
 0x159   : > { %2976 = vmatpush3.bf16.msra.mxu0 %v3337_v2  ;;  %v3368_v19 = vld [vmem:[#allocation13 + $0x80] ss:$16 sps:$4 sm:$0xff]   ;;  %v3372_v20 = vld [vmem:[#allocation13 + $0x64] ss:$16 sps:$4 sm:$0xff]   ;;  %v3379_v28 = vld [vmem:[#allocation13 + $0xac] ss:$16 sps:$4 sm:$0xff]  }
 0x15a   : > { %2977 = vmatprep.subr.bf16.mxu0 %v3338_v4  ;;  %v3345_v21 = vld [vmem:[%s4297_s22 + $0x8] sm:$0xff]   ;;  %v3375_v25 = vld [vmem:[#allocation13 + $0x60] ss:$16 sps:$4 sm:$0xff]   ;;  %v3347_v30 = vld [vmem:[%s4297_s22 + $0x18] sm:$0xff]  }
 0x15b   : > { %1190 = vmatpush1.bf16.msra.mxu1 %v3357_v12  ;;  %v3380_v26 = vld [vmem:[#allocation13 + $0x44] ss:$16 sps:$4 sm:$0xff]   ;;  %v3382_v29 = vld [vmem:[#allocation13 + $0x40] ss:$16 sps:$4 sm:$0xff]   ;;  %v3377_v33 = vld [vmem:[#allocation13 + $0xa8] ss:$16 sps:$4 sm:$0xff]  }
 0x15c   : > { %1191 = vmatprep.subr.bf16.mxu1 %v3358_v14  ;;  %v3386_v31 = vld [vmem:[#allocation13 + $0x24] ss:$16 sps:$4 sm:$0xff]   ;;  %v3348_v32 = vld [vmem:[%s4297_s22 + $0x20] sm:$0xff]   ;;  %v3383_v37 = vld [vmem:[#allocation13 + $0x88] ss:$16 sps:$4 sm:$0xff]  }
 0x15d   : > { %2978 = vmatpush3.bf16.msra.mxu0 %v3338_v4  ;;  %v3385_v34 = vld [vmem:[#allocation13 + $0x8c] ss:$16 sps:$4 sm:$0xff]   ;;  %v3389_v35 = vld [vmem:[#allocation13 + $0x20] ss:$16 sps:$4 sm:$0xff]   ;;  %v3394_v36 = vld [vmem:[#allocation13 + $0x4] ss:$16 sps:$4 sm:$0xff]  }
 0x15e   : > { %2979 = vmatprep.subr.bf16.mxu0 %v3339_v5  ;;  %v3349_v38 = vld [vmem:[%s4297_s22 + $0x28] sm:$0xff]   ;;  %v3393_v39 = vld [vmem:[#allocation13 + $0x6c] ss:$16 sps:$4 sm:$0xff]   ;;  %v3396_v40 = vld [vmem:[#allocation13] ss:$16 sps:$4 sm:$0xff]  }
 0x15f   : > { %1192 = vmatpush1.bf16.msra.mxu1 %v3361_v15  ;;  %v3350_v41 = vld [vmem:[%s4297_s22 + $0x30] sm:$0xff]   ;;  %v3391_v42 = vld [vmem:[#allocation13 + $0x68] ss:$16 sps:$4 sm:$0xff]   ;;  %v3400_v44 = vld [vmem:[%s4305_s20] sm:$0xff]  }
 0x160   : > { %1193 = vmatprep.subr.bf16.mxu1 %v3366_v17  ;;  %v3399_v43 = vld [vmem:[#allocation13 + $0x4c] ss:$16 sps:$4 sm:$0xff]   ;;  %v3397_v45 = vld [vmem:[#allocation13 + $0x48] ss:$16 sps:$4 sm:$0xff]  }
 0x161   : > { %2980 = vmatpush3.bf16.msra.mxu0 %v3339_v5  ;;  %v3405_v46 = vld [vmem:[#allocation13 + $0x2c] ss:$16 sps:$4 sm:$0xff]   ;;  %v3351_v47 = vld [vmem:[%s4297_s22 + $0x38] sm:$0xff]   ;;  %v3409_v51 = vld [vmem:[%s4305_s20 + $0x8] sm:$0xff]  }
 0x162   : > { %2981 = vmatprep.subr.bf16.mxu0 %v3340_v7  ;;  %v3360_v48 = vld [vmem:[%s4297_s22 + $0x40] sm:$0xff]   ;;  %v3403_v49 = vld [vmem:[#allocation13 + $0x28] ss:$16 sps:$4 sm:$0xff]   ;;  %v3374_v54 = vld [vmem:[%s4297_s22 + $0x50] sm:$0xff]  }
 0x163   : > { %1194 = vmatpush1.bf16.msra.mxu1 %v3368_v19  ;;  %v3408_v50 = vld [vmem:[#allocation13 + $0xc] ss:$16 sps:$4 sm:$0xff]   ;;  %v3406_v52 = vld [vmem:[#allocation13 + $0x8] ss:$16 sps:$4 sm:$0xff]  }
 0x164   : > { %1195 = vmatprep.subr.bf16.mxu1 %v3372_v20  ;;  %v3362_v53 = vld [vmem:[%s4297_s22 + $0x48] sm:$0xff]   ;;  %v3410_v55 = vld [vmem:[%s4305_s20 + $0x10] sm:$0xff]   ;;  %v3376_v56 = vld [vmem:[%s4297_s22 + $0x58] sm:$0xff]  }
 0x165   : > { %2982 = vmatpush3.bf16.msra.mxu0 %v3340_v7  ;;  %v3388_v57 = vld [vmem:[%s4297_s22 + $0x60] sm:$0xff]   ;;  %v3411_v58 = vld [vmem:[%s4305_s20 + $0x18] sm:$0xff]   ;;  %v3390_v59 = vld [vmem:[%s4297_s22 + $0x68] sm:$0xff]  }
 0x166   : > { %2983 = vmatprep.subr.bf16.mxu0 %v3341_v8  ;;  %v3401_v60 = vld [vmem:[%s4297_s22 + $0x70] sm:$0xff]   ;;  %v3412_v61 = vld [vmem:[%s4305_s20 + $0x20] sm:$0xff]   ;;  %v3402_v62 = vld [vmem:[%s4297_s22 + $0x78] sm:$0xff]   ;;  %s2865_s22 = sshll.u32 %s5705_s3, 6 }
 0x167   : > { %1196 = vmatpush1.bf16.msra.mxu1 %v3375_v25  ;;  %v3413_v63 = vld [vmem:[%s4305_s20 + $0x28] sm:$0xff]   ;;  %v3414_v0 = vld [vmem:[%s4305_s20 + $0x30] sm:$0xff]   ;;  %v3415_v1 = vld [vmem:[%s4305_s20 + $0x38] sm:$0xff]  }
 0x168   : > { %1197 = vmatprep.subr.bf16.mxu1 %v3380_v26  ;;  %v3416_v2 = vld [vmem:[%s4305_s20 + $0x40] sm:$0xff]   ;;  %v3417_v4 = vld [vmem:[%s4305_s20 + $0x48] sm:$0xff]   ;;  %v3418_v5 = vld [vmem:[%s4305_s20 + $0x50] sm:$0xff]  }
 0x169   : > { %2984 = vmatpush3.bf16.msra.mxu0 %v3341_v8  ;;  %v3419_v6 = vld [vmem:[%s4305_s20 + $0x58] sm:$0xff]  }
 0x16a   : > { %2985 = vmatprep.subr.bf16.mxu0 %v3342_v13 }
 0x16b   : > { %1198 = vmatpush1.bf16.msra.mxu1 %v3382_v29 }
 0x16c   : > { %1199 = vmatprep.subr.bf16.mxu1 %v3386_v31 }
 0x16d   : > { %2986 = vmatpush3.bf16.msra.mxu0 %v3342_v13  ;;  %v5469_v13 = vmov 2  }
 0x16e   : > { %2987 = vmatprep.subr.bf16.mxu0 %v3343_v16 }
 0x16f   : > { %1200 = vmatpush1.bf16.msra.mxu1 %v3389_v35 }
 0x170   : > { %1201 = vmatprep.subr.bf16.mxu1 %v3394_v36 }
 0x171   : > { %2988 = vmatpush3.bf16.msra.mxu0 %v3343_v16 }
 0x172   : > { %1380 = vmatprep.subr.bf16.mxu0 %v3365_v18 }
 0x173   : > { %1202 = vmatpush1.bf16.msra.mxu1 %v3396_v40  ;;  %v3423_v40 = vld [vmem:[%s4305_s20 + $0x78] sm:$0xff]  }
 0x174   : > { %2990 = vmatmul.mubr.bf16.vlgmr.msra.gmra.mxu0 %v3345_v21 }
 0x175   : > { %2993 = vmatprep.mubr.bf16.mxu0 %v3346_v22  ;;  %1381 = vmatpush1.bf16.msra.mxu0 %v3363_v23  ;;  %v3420_v22 = vld [vmem:[%s4305_s20 + $0x60] sm:$0xff]  }
 0x176   : > { %1382 = vmatprep.subr.bf16.mxu0 %v3371_v24  ;;  %1220 = vmatmul.mubr.bf16.vlgmr.msra.gmra.mxu1 %v3400_v44 }
 0x177   : > { %1229 = vmatprep.mubr.bf16.mxu1 %v5463_v3 }
 0x179   : > { %1383 = vmatpush1.bf16.msra.mxu0 %v3369_v27  ;;  %v3421_v27 = vld [vmem:[%s4305_s20 + $0x68] sm:$0xff]  }
 0x17a   : > { %1384 = vmatprep.subr.bf16.mxu0 %v3379_v28  ;;  %v5465_v28 = vmov 3  }
 0x17c   : > { %2994 = vmatmul.mubr.bf16.gmra.mxu0 %v3347_v30 }
 0x17d   : > { %2997 = vmatprep.mubr.bf16.mxu0 %v3348_v32  ;;  %1385 = vmatpush1.bf16.msra.mxu0 %v3377_v33 }
 0x17e   : > { %1386 = vmatprep.subr.bf16.mxu0 %v3385_v34  ;;  %1230 = vmatmul.mubr.bf16.gmra.mxu1 %v3409_v51 }
 0x17f   : > { %1239 = vmatprep.mubr.bf16.mxu1 %v5463_v3 }
 0x181   : > { %1387 = vmatpush1.bf16.msra.mxu0 %v3383_v37  ;;  %v3422_v37 = vld [vmem:[%s4305_s20 + $0x70] sm:$0xff]  }
 0x182   : > { %1388 = vmatprep.subr.bf16.mxu0 %v3393_v39 }
 0x184   : > { %2998 = vmatmul.mubr.bf16.gmra.mxu0 %v3349_v38 }
 0x185   : > { %3001 = vmatprep.mubr.bf16.mxu0 %v3350_v41  ;;  %1389 = vmatpush1.bf16.msra.mxu0 %v3391_v42 }
 0x186   : > { %1390 = vmatprep.subr.bf16.mxu0 %v3399_v43  ;;  %1240 = vmatmul.mubr.bf16.gmra.mxu1 %v3410_v55 }
 0x187   : > { %1249 = vmatprep.mubr.bf16.mxu1 %v5463_v3 }
 0x189   : > { %1391 = vmatpush1.bf16.msra.mxu0 %v3397_v45 }
 0x18a   : > { %1392 = vmatprep.subr.bf16.mxu0 %v3405_v46 }
 0x18c   : > { %3002 = vmatmul.mubr.bf16.gmra.mxu0 %v3351_v47 }
 0x18d   : > { %3005 = vmatprep.mubr.bf16.mxu0 %v3360_v48  ;;  %1393 = vmatpush1.bf16.msra.mxu0 %v3403_v49 }
 0x18e   : > { %1394 = vmatprep.subr.bf16.mxu0 %v3408_v50  ;;  %1250 = vmatmul.mubr.bf16.gmra.mxu1 %v3411_v58 }
 0x18f   : > { %1259 = vmatprep.mubr.bf16.mxu1 %v5463_v3 }
 0x191   : > { %1395 = vmatpush1.bf16.msra.mxu0 %v3406_v52 }
 0x194   : > { %3006 = vmatmul.mubr.bf16.gmra.mxu0 %v3362_v53 }
 0x195   : > { %3009 = vmatprep.mubr.bf16.mxu0 %v3374_v54 }
 0x196   : > { %1260 = vmatmul.mubr.bf16.gmra.mxu1 %v3412_v61 }
 0x197   : > { %1269 = vmatprep.mubr.bf16.mxu1 %v5463_v3 }
 0x19c   : > { %3010 = vmatmul.mubr.bf16.gmra.mxu0 %v3376_v56 }
 0x19d   : > { %3013 = vmatprep.mubr.bf16.mxu0 %v3388_v57 }
 0x19e   : > { %1270 = vmatmul.mubr.bf16.gmra.mxu1 %v3413_v63 }
 0x19f   : > { %1279 = vmatprep.mubr.bf16.mxu1 %v5463_v3 }
 0x1a4   : > { %3014 = vmatmul.mubr.bf16.gmra.mxu0 %v3390_v59 }
 0x1a5   : > { %3017 = vmatprep.mubr.bf16.mxu0 %v3401_v60 }
 0x1a6   : > { %1280 = vmatmul.mubr.bf16.gmra.mxu1 %v3414_v0 }
 0x1a7   : > { %1289 = vmatprep.mubr.bf16.mxu1 %v5463_v3 }
 0x1ac   : > { %3018 = vmatmul.mubr.bf16.gmra.mxu0 %v3402_v62 }
 0x1ad   : > { %1412 = vmatprep.mubr.bf16.mxu0 %v5463_v3 }
 0x1ae   : > { %1290 = vmatmul.mubr.bf16.gmra.mxu1 %v3415_v1 }
 0x1af   : > { %1299 = vmatprep.mubr.bf16.mxu1 %v5463_v3 }
 0x1b4   : > { %1413 = vmatmul.mubr.bf16.vlgmr.msra.gmra.mxu0 %v3400_v44 }
 0x1b5   : > { %1422 = vmatprep.mubr.bf16.mxu0 %v5463_v3 }
 0x1b6   : > { %1300 = vmatmul.mubr.bf16.gmra.mxu1 %v3416_v2 }
 0x1b7   : > { %1309 = vmatprep.mubr.bf16.mxu1 %v5463_v3 }
 0x1bc   : > { %1423 = vmatmul.mubr.bf16.gmra.mxu0 %v3409_v51 }
 0x1bd   : > { %1432 = vmatprep.mubr.bf16.mxu0 %v5463_v3 }
 0x1be   : > { %1310 = vmatmul.mubr.bf16.gmra.mxu1 %v3417_v4 }
 0x1bf   : > { %1319 = vmatprep.mubr.bf16.mxu1 %v5463_v3 }
 0x1c4   : > { %1433 = vmatmul.mubr.bf16.gmra.mxu0 %v3410_v55 }
 0x1c5   : > { %1442 = vmatprep.mubr.bf16.mxu0 %v5463_v3 }
 0x1c6   : > { %1320 = vmatmul.mubr.bf16.gmra.mxu1 %v3418_v5 }
 0x1c7   : > { %1329 = vmatprep.mubr.bf16.mxu1 %v5463_v3 }
 0x1cc   : > { %1443 = vmatmul.mubr.bf16.gmra.mxu0 %v3411_v58 }
 0x1cd   : > { %1452 = vmatprep.mubr.bf16.mxu0 %v5463_v3 }
 0x1ce   : > { %1330 = vmatmul.mubr.bf16.gmra.mxu1 %v3419_v6 }
 0x1cf   : > { %1339 = vmatprep.mubr.bf16.mxu1 %v5463_v3 }
 0x1d4   : > { %1453 = vmatmul.mubr.bf16.gmra.mxu0 %v3412_v61 }
 0x1d5   : > { %1462 = vmatprep.mubr.bf16.mxu0 %v5463_v3 }
 0x1d6   : > { %1340 = vmatmul.mubr.bf16.gmra.mxu1 %v3420_v22 }
 0x1d7   : > { %1349 = vmatprep.mubr.bf16.mxu1 %v5463_v3 }
 0x1dc   : > { %1463 = vmatmul.mubr.bf16.gmra.mxu0 %v3413_v63 }
 0x1dd   : > { %1472 = vmatprep.mubr.bf16.mxu0 %v5463_v3 }
 0x1de   : > { %1350 = vmatmul.mubr.bf16.gmra.mxu1 %v3421_v27 }
 0x1df   : > { %1359 = vmatprep.mubr.bf16.mxu1 %v5463_v3 }
 0x1e4   : > { %1473 = vmatmul.mubr.bf16.gmra.mxu0 %v3414_v0 }
 0x1e5   : > { %1482 = vmatprep.mubr.bf16.mxu0 %v5463_v3 }
 0x1e6   : > { %1360 = vmatmul.mubr.bf16.gmra.mxu1 %v3422_v37 }
 0x1e7   : > { %1369 = vmatprep.mubr.bf16.mxu1 %v5463_v3 }
 0x1ec   : > { %1483 = vmatmul.mubr.bf16.gmra.mxu0 %v3415_v1 }
 0x1ed   : > { %1492 = vmatprep.mubr.bf16.mxu0 %v5463_v3 }
 0x1ee   : > { %1370 = vmatmul.mubr.bf16.gmra.mxu1 %v3423_v40 }
 0x1f4   : > { %1493 = vmatmul.mubr.bf16.gmra.mxu0 %v3416_v2 }
 0x1f5   : > { %1502 = vmatprep.mubr.bf16.mxu0 %v5463_v3 }
 0x1fc   : > { %1503 = vmatmul.mubr.bf16.gmra.mxu0 %v3417_v4 }
 0x1fd   : > { %1512 = vmatprep.mubr.bf16.mxu0 %v5463_v3 }
 0x204   : > { %1513 = vmatmul.mubr.bf16.gmra.mxu0 %v3418_v5 }
 0x205   : > { %1522 = vmatprep.mubr.bf16.mxu0 %v5463_v3 }
 0x20c   : > { %1523 = vmatmul.mubr.bf16.gmra.mxu0 %v3419_v6 }
 0x20d   : > { %1532 = vmatprep.mubr.bf16.mxu0 %v5463_v3 }
 0x214   : > { %1533 = vmatmul.mubr.bf16.gmra.mxu0 %v3420_v22 }
 0x215   : > { %1542 = vmatprep.mubr.bf16.mxu0 %v5463_v3 }
 0x21c   : > { %1543 = vmatmul.mubr.bf16.gmra.mxu0 %v3421_v27 }
 0x21d   : > { %1552 = vmatprep.mubr.bf16.mxu0 %v5463_v3 }
 0x224   : > { %1553 = vmatmul.mubr.bf16.gmra.mxu0 %v3422_v37 }
 0x225   : > { %1562 = vmatprep.mubr.bf16.mxu0 %v5463_v3 }
 0x22c   : > { %1563 = vmatmul.mubr.bf16.gmra.mxu0 %v3423_v40 }
 0x234   : > { %v4395_v7 = vpop.f32.mrf.mxu0 }
 0x235   : > { %5597 = vst [vmem:[#allocation53_spill] sm:$0xff] %v4395_v7  ;;  %1585 = vperm.xlu1 %3240, %v4395_v7  }
 0x236   : > { %v4398_v8 = vpop.f32.mrf.mxu0  ;;  %v4521_v43 = vpop.f32.mrf.mxu1 }
 0x237   : > { %5598 = vst [vmem:[#allocation54_spill] sm:$0xff] %v4398_v8  ;;  %1575 = vperm.xlu0 %3243, %v4398_v8   ;;  %5603 = vst [vmem:[#allocation59_spill] sm:$0xff] %v4521_v43  ;;  %v5639_v43 = vmov 1  }
 0x238   : > { %v4401_v9 = vpop.f32.mrf.mxu0  ;;  %v4528_v45 = vpop.f32.mrf.mxu1 }
 0x239   : > { %5599 = vst [vmem:[#allocation55_spill] sm:$0xff] %v4401_v9  ;;  %3241 = vset.pattern.permute.xlu1 %v5467_v10  ;;  %5604 = vst [vmem:[#allocation60_spill] sm:$0xff] %v4528_v45 }
 0x23a   : > { %1806 = vperm.xlu1 %3241, %v4395_v7   ;;  %v4405_v11 = vpop.f32.mrf.mxu0  ;;  %v4534_v47 = vpop.f32.mrf.mxu1 }
 0x23b   : > { %5600 = vst [vmem:[#allocation56_spill] sm:$0xff] %v4405_v11  ;;  %3244 = vset.pattern.permute.xlu0 %v5467_v10  ;;  %5606 = vst [vmem:[#allocation62_spill] sm:$0xff] %v4534_v47 }
 0x23c   : > { %1798 = vperm.xlu0 %3244, %v4398_v8   ;;  %v2995_v12 = vpop.f32.mrf.mxu0  ;;  %v4541_v49 = vpop.f32.mrf.mxu1 }
 0x23d   : > { %5607 = vst [vmem:[#allocation63_spill] sm:$0xff] %v4541_v49 }
 0x23e   : > { %3242 = vset.pattern.permute.xlu1 %v5469_v13  ;;  %v4410_v14 = vpop.f32.mrf.mxu0  ;;  %v4548_v51 = vpop.f32.mrf.mxu1 }
 0x23f   : > { %1998 = vperm.xlu1 %3242, %v4395_v7   ;;  %5609 = vst [vmem:[#allocation65_spill] sm:$0xff] %v4548_v51 }
 0x240   : > { %1810 = vperm.xlu0 %3244, %v4401_v9   ;;  %v4414_v15 = vpop.f32.mrf.mxu0  ;;  %v4554_v53 = vpop.f32.mrf.mxu1 }
 0x241   : > { %5611 = vst [vmem:[#allocation67_spill] sm:$0xff] %v4554_v53  ;;  %v5643_v53 = vmov 3  }
 0x242   : > { %v4420_v16 = vpop.f32.mrf.mxu0  ;;  %v4558_v54 = vpop.f32.mrf.mxu1 }
 0x243   : > { %3245 = vset.pattern.permute.xlu1 %v5463_v3  ;;  %5612 = vst [vmem:[#allocation68_spill] sm:$0xff] %v4558_v54 }
 0x244   : > { %3247 = vset.pattern.permute.xlu0 %v5463_v3  ;;  %1590 = vperm.xlu1 %3245, %v4401_v9   ;;  %v4422_v17 = vpop.f32.mrf.mxu0  ;;  %v4565_v56 = vpop.f32.mrf.mxu1 }
 0x245   : > { %1580 = vperm.xlu0 %3247, %v4405_v11   ;;  %5614 = vst [vmem:[#allocation70_spill] sm:$0xff] %v4565_v56 }
 0x246   : > { %v4426_v18 = vpop.f32.mrf.mxu0  ;;  %v4569_v58 = vpop.f32.mrf.mxu1 }
 0x247   : > { %5616 = vst [vmem:[#allocation72_spill] sm:$0xff] %v4569_v58 }
 0x248   : > { %3246 = vset.pattern.permute.xlu1 %v5469_v13  ;;  %v4428_v19 = vpop.f32.mrf.mxu0  ;;  %v4577_v60 = vpop.f32.mrf.mxu1 }
 0x249   : > { %2002 = vperm.xlu1 %3246, %v4401_v9   ;;  %1605 = vperm.xlu0 %3247, %v2995_v12   ;;  %5618 = vst [vmem:[#allocation74_spill] sm:$0xff] %v4577_v60 }
 0x24a   : > { %v4432_v20 = vpop.f32.mrf.mxu0  ;;  %v4585_v62 = vpop.f32.mrf.mxu1 }
 0x24c   : > { %v4435_v21 = vpop.f32.mrf.mxu0  ;;  %v4595_v2 = vpop.f32.mrf.mxu1 }
 0x24d   : > { %3248 = vset.pattern.permute.xlu1 %v5467_v10  ;;  %1595 = vperm.xlu0 %3247, %v4410_v14  }
 0x24e   : > { %1802 = vperm.xlu1 %3248, %v4405_v11   ;;  %v4439_v23 = vpop.f32.mrf.mxu0  ;;  %v4604_v6 = vpop.f32.mrf.mxu1 }
 0x250   : > { %v4442_v24 = vpop.f32.mrf.mxu0 }
 0x251   : > { %3254 = vset.pattern.permute.xlu0 %v5467_v10 }
 0x252   : > { %1822 = vperm.xlu1 %3248, %v2995_v12   ;;  %1826 = vperm.xlu0 %3254, %v4414_v15   ;;  %v4446_v25 = vpop.f32.mrf.mxu0 }
 0x254   : > { %v4450_v26 = vpop.f32.mrf.mxu0 }
 0x256   : > { %3249 = vset.pattern.permute.xlu1 %v5469_v13  ;;  %1818 = vperm.xlu0 %3254, %v4420_v16   ;;  %v4456_v29 = vpop.f32.mrf.mxu0 }
 0x257   : > { %2014 = vperm.xlu1 %3249, %v2995_v12   ;;  %5601 = vst [vmem:[#allocation57_spill] sm:$0xff] %v4456_v29 }
 0x258   : > { %v4461_v30 = vpop.f32.mrf.mxu0 }
 0x25a   : > { %3258 = vset.pattern.permute.xlu0 %v5469_v13  ;;  %v4466_v31 = vpop.f32.mrf.mxu0 }
 0x25b   : > { %3250 = vset.pattern.permute.xlu1 %v5465_v28  ;;  %2010 = vperm.xlu0 %3258, %v4420_v16  }
 0x25c   : > { %2206 = vperm.xlu1 %3250, %v2995_v12   ;;  %v4471_v32 = vpop.f32.mrf.mxu0 }
 0x25e   : > { %v4477_v33 = vpop.f32.mrf.mxu0 }
 0x25f   : > { %3260 = vset.pattern.permute.xlu0 %v5463_v3 }
 0x260   : > { %3251 = vset.pattern.permute.xlu1 %v5467_v10  ;;  %1625 = vperm.xlu0 %3260, %v4422_v17   ;;  %v4481_v34 = vpop.f32.mrf.mxu0 }
 0x261   : > { %1814 = vperm.xlu1 %3251, %v4410_v14  }
 0x262   : > { %v4486_v35 = vpop.f32.mrf.mxu0 }
 0x264   : > { %1615 = vperm.xlu0 %3260, %v4426_v18   ;;  %v4492_v36 = vpop.f32.mrf.mxu0 }
 0x265   : > { %3252 = vset.pattern.permute.xlu1 %v5469_v13 }
 0x266   : > { %2006 = vperm.xlu1 %3252, %v4410_v14   ;;  %v4498_v38 = vpop.f32.mrf.mxu0 }
 0x268   : > { %3267 = vset.pattern.permute.xlu0 %v5467_v10  ;;  %v4505_v39 = vpop.f32.mrf.mxu0 }
 0x269   : > { %1842 = vperm.xlu0 %3267, %v4428_v19  }
 0x26a   : > { %3253 = vset.pattern.permute.xlu1 %v5463_v3  ;;  %v4511_v41 = vpop.f32.mrf.mxu0 }
 0x26b   : > { %1610 = vperm.xlu1 %3253, %v4414_v15   ;;  %5602 = vst [vmem:[#allocation58_spill] sm:$0xff] %v4511_v41 }
 0x26c   : > { %v4516_v42 = vpop.f32.mrf.mxu0 }
 0x26d   : > { %1834 = vperm.xlu0 %3267, %v4432_v20  }
 0x26e   : > { %v4523_v44 = vpop.f32.mrf.mxu0 }
 0x26f   : > { %3255 = vset.pattern.permute.xlu1 %v5469_v13 }
 0x270   : > { %2018 = vperm.xlu1 %3255, %v4414_v15   ;;  %v4531_v46 = vpop.f32.mrf.mxu0 }
 0x271   : > { %3271 = vset.pattern.permute.xlu0 %v5469_v13  ;;  %5605 = vst [vmem:[#allocation61_spill] sm:$0xff] %v4531_v46 }
 0x272   : > { %2026 = vperm.xlu0 %3271, %v4432_v20   ;;  %v4538_v48 = vpop.f32.mrf.mxu0 }
 0x274   : > { %3256 = vset.pattern.permute.xlu1 %v5465_v28  ;;  %v4544_v50 = vpop.f32.mrf.mxu0 }
 0x275   : > { %2210 = vperm.xlu1 %3256, %v4414_v15   ;;  %5608 = vst [vmem:[#allocation64_spill] sm:$0xff] %v4544_v50  ;;  %v5635_v50 = vmov 0  }
 0x276   : > { %3273 = vset.pattern.permute.xlu0 %v5463_v3  ;;  %v4550_v52 = vpop.f32.mrf.mxu0 }
 0x277   : > { %1645 = vperm.xlu0 %3273, %v4435_v21   ;;  %5610 = vst [vmem:[#allocation66_spill] sm:$0xff] %v4550_v52 }
 0x278   : > { %v4560_v55 = vpop.f32.mrf.mxu0 }
 0x279   : > { %3257 = vset.pattern.permute.xlu1 %v5463_v3  ;;  %5613 = vst [vmem:[#allocation69_spill] sm:$0xff] %v4560_v55 }
 0x27a   : > { %1600 = vperm.xlu1 %3257, %v4420_v16   ;;  %v4567_v57 = vpop.f32.mrf.mxu0 }
 0x27b   : > { %3274 = vset.pattern.permute.xlu0 %v5467_v10  ;;  %5615 = vst [vmem:[#allocation71_spill] sm:$0xff] %v4567_v57 }
 0x27c   : > { %1854 = vperm.xlu0 %3274, %v4435_v21   ;;  %v4575_v59 = vpop.f32.mrf.mxu0 }
 0x27d   : > { %5617 = vst [vmem:[#allocation73_spill] sm:$0xff] %v4575_v59 }
 0x27e   : > { %3259 = vset.pattern.permute.xlu1 %v5465_v28  ;;  %v4579_v61 = vpop.f32.mrf.mxu0 }
 0x27f   : > { %2202 = vperm.xlu1 %3259, %v4420_v16   ;;  %5619 = vst [vmem:[#allocation75_spill] sm:$0xff] %v4579_v61 }
 0x280   : > { %3277 = vset.pattern.permute.xlu0 %v5463_v3  ;;  %v4587_v63 = vpop.f32.mrf.mxu0 }
 0x281   : > { %1635 = vperm.xlu0 %3277, %v4439_v23   ;;  %5620 = vst [vmem:[#allocation76_spill] sm:$0xff] %v4587_v63 }
 0x282   : > { %v4590_v0 = vpop.f32.mrf.mxu0 }
 0x283   : > { %3261 = vset.pattern.permute.xlu1 %v5467_v10  ;;  %5621 = vst [vmem:[#allocation77_spill] sm:$0xff] %v4590_v0 }
 0x284   : > { %1838 = vperm.xlu1 %3261, %v4422_v17   ;;  %v4601_v5 = vpop.f32.mrf.mxu0 }
 0x285   : > { %3279 = vset.pattern.permute.xlu0 %v5469_v13  ;;  %5624 = vst [vmem:[#allocation80_spill] sm:$0xff] %v4601_v5 }
 0x286   : > { %2038 = vperm.xlu0 %3279, %v4439_v23   ;;  %v4612_v16 = vpop.f32.mrf.mxu0 }
 0x287   : > { %5627 = vst [vmem:[#allocation83_spill] sm:$0xff] %v4612_v16 }
 0x288   : > { %3262 = vset.pattern.permute.xlu1 %v5469_v13  ;;  %v4624_v22 = vpop.f32.mrf.mxu0 }
 0x289   : > { %2030 = vperm.xlu1 %3262, %v4422_v17  }
 0x28a   : > { %2050 = vperm.xlu0 %3279, %v4442_v24   ;;  %v4633_v40 = vpop.f32.mrf.mxu0 }
 0x28b   : > { %5631 = vst [vmem:[#allocation87_spill] sm:$0xff] %v4633_v40 }
 0x28c   : > { %v4644_v57 = vpop.f32.mrf.mxu0 }
 0x28d   : > { %3263 = vset.pattern.permute.xlu1 %v5465_v28 }
 0x28e   : > { %2222 = vperm.xlu1 %3263, %v4422_v17   ;;  %3283 = vset.pattern.permute.xlu0 %v5467_v10  ;;  %v4615_v17 = vpop.f32.mrf.mxu1  ;;  %v4652_v55 = vpop.f32.mrf.mxu0 }
 0x28f   : > { %1850 = vperm.xlu0 %3283, %v4446_v25  }
 0x290   : > { %v4626_v27 = vpop.f32.mrf.mxu1  ;;  %v4660_v47 = vpop.f32.mrf.mxu0 }
 0x292   : > { %3264 = vset.pattern.permute.xlu1 %v5467_v10  ;;  %v4666_v49 = vpop.f32.mrf.mxu0 }
 0x293   : > { %1830 = vperm.xlu1 %3264, %v4426_v18   ;;  %3286 = vset.pattern.permute.xlu0 %v5463_v3 }
 0x294   : > { %1665 = vperm.xlu0 %3286, %v4450_v26   ;;  %v4671_v45 = vpop.f32.mrf.mxu0 }
 0x295   : > { %5640 = vst [vmem:[#allocation94_spill] sm:$0xff] %v4671_v45 }
 0x297   : > { %3265 = vset.pattern.permute.xlu1 %v5469_v13 }
 0x298   : > { %2022 = vperm.xlu1 %3265, %v4426_v18   ;;  %1655 = vperm.xlu0 %3286, %v4456_v29  }
 0x29c   : > { %3266 = vset.pattern.permute.xlu1 %v5463_v3  ;;  %3290 = vset.pattern.permute.xlu0 %v5467_v10 }
 0x29d   : > { %1630 = vperm.xlu1 %3266, %v4428_v19   ;;  %1862 = vperm.xlu0 %3290, %v4456_v29  }
 0x2a1   : > { %3268 = vset.pattern.permute.xlu1 %v5469_v13  ;;  %1874 = vperm.xlu0 %3290, %v4461_v30  }
 0x2a2   : > { %2034 = vperm.xlu1 %3268, %v4428_v19  }
 0x2a5   : > { %3292 = vset.pattern.permute.xlu0 %v5469_v13 }
 0x2a6   : > { %3269 = vset.pattern.permute.xlu1 %v5465_v28  ;;  %2066 = vperm.xlu0 %3292, %v4461_v30  }
 0x2a7   : > { %2226 = vperm.xlu1 %3269, %v4428_v19  }
 0x2aa   : > { %3294 = vset.pattern.permute.xlu0 %v5463_v3 }
 0x2ab   : > { %3270 = vset.pattern.permute.xlu1 %v5463_v3  ;;  %1685 = vperm.xlu0 %3294, %v4471_v32  }
 0x2ac   : > { %1620 = vperm.xlu1 %3270, %v4432_v20  }
 0x2af   : > { %1675 = vperm.xlu0 %3294, %v4477_v33  }
 0x2b0   : > { %v4592_v1 = vpop.permute.xlu1 %1585  ;;  %3272 = vset.pattern.permute.xlu1 %v5465_v28 }
 0x2b1   : > { %5622 = vst [vmem:[#allocation78_spill] sm:$0xff] %v4592_v1  ;;  %2218 = vperm.xlu1 %3272, %v4432_v20  }
 0x2b2   : > { %v4598_v4 = vpop.permute.xlu0 %1575 }
 0x2b3   : > { %5623 = vst [vmem:[#allocation79_spill] sm:$0xff] %v4598_v4  ;;  %3297 = vset.pattern.permute.xlu0 %v5467_v10 }
 0x2b4   : > { %1878 = vperm.xlu0 %3297, %v4477_v33  }
 0x2b5   : > { %v4606_v12 = vpop.permute.xlu1 %1806  ;;  %3275 = vset.pattern.permute.xlu1 %v5469_v13 }
 0x2b6   : > { %5625 = vst [vmem:[#allocation81_spill] sm:$0xff] %v4606_v12  ;;  %2046 = vperm.xlu1 %3275, %v4435_v21  }
 0x2b7   : > { %v4610_v15 = vpop.permute.xlu0 %1798 }
 0x2b8   : > { %5626 = vst [vmem:[#allocation82_spill] sm:$0xff] %v4610_v15  ;;  %3298 = vset.pattern.permute.xlu0 %v5469_v13 }
 0x2b9   : > { %2070 = vperm.xlu0 %3298, %v4477_v33  }
 0x2ba   : > { %v4618_v19 = vpop.permute.xlu1 %1998  ;;  %3276 = vset.pattern.permute.xlu1 %v5465_v28  ;;  %v4638_v28 = vpop.f32.mrf.mxu1 }
 0x2bb   : > { %5628 = vst [vmem:[#allocation84_spill] sm:$0xff] %v4618_v19  ;;  %v4621_v20 = vpop.permute.xlu0 %1810  ;;  %2238 = vperm.xlu1 %3276, %v4435_v21  }
 0x2bc   : > { %5629 = vst [vmem:[#allocation85_spill] sm:$0xff] %v4621_v20  ;;  %v4641_v21 = vpop.f32.mrf.mxu1 }
 0x2bd   : > { %3300 = vset.pattern.permute.xlu0 %v5467_v10  ;;  %5633 = vst [vmem:[#allocation89_spill] sm:$0xff] %v4641_v21 }
 0x2be   : > { %1890 = vperm.xlu0 %3300, %v4481_v34  }
 0x2bf   : > { %v4630_v37 = vpop.permute.xlu1 %1590  ;;  %3278 = vset.pattern.permute.xlu1 %v5467_v10 }
 0x2c0   : > { %5630 = vst [vmem:[#allocation86_spill] sm:$0xff] %v4630_v37  ;;  %v4635_v3 = vpop.permute.xlu0 %1580  ;;  %1846 = vperm.xlu1 %3278, %v4439_v23  }
 0x2c1   : > { %5632 = vst [vmem:[#allocation88_spill] sm:$0xff] %v4635_v3  ;;  %v4654_v3 = vpop.f32.mrf.mxu1 }
 0x2c2   : > { %3301 = vset.pattern.permute.xlu0 %v5469_v13  ;;  %5636 = vst [vmem:[#allocation91_spill] sm:$0xff] %v4654_v3 }
 0x2c3   : > { %2082 = vperm.xlu0 %3301, %v4481_v34   ;;  %v4668_v15 = vpop.f32.mrf.mxu1 }
 0x2c4   : > { %v4646_v52 = vpop.permute.xlu1 %2002  ;;  %3280 = vset.pattern.permute.xlu1 %v5635_v50  ;;  %v4649_v10 = vpop.permute.xlu0 %1605 }
 0x2c5   : > { %5634 = vst [vmem:[#allocation90_spill] sm:$0xff] %v4646_v52  ;;  %1650 = vperm.xlu1 %3280, %v4442_v24   ;;  %v4674_v19 = vpop.f32.mrf.mxu1  ;;  %v5642_v52 = vmov 2  }
 0x2c7   : > { %3305 = vset.pattern.permute.xlu0 %v5635_v50  ;;  %v4683_v51 = vpop.f32.mrf.mxu1 }
 0x2c8   : > { %1705 = vperm.xlu0 %3305, %v4492_v36   ;;  %v4658_v13 = vpop.permute.xlu0 %1595 }
 0x2c9   : > { %5637 = vst [vmem:[#allocation92_spill] sm:$0xff] %v4658_v13  ;;  %v4662_v4 = vpop.permute.xlu1 %1802  ;;  %3281 = vset.pattern.permute.xlu1 %v5639_v43  ;;  %v4691_v20 = vpop.f32.mrf.mxu1 }
 0x2ca   : > { %5638 = vst [vmem:[#allocation93_spill] sm:$0xff] %v4662_v4  ;;  %1858 = vperm.xlu1 %3281, %v4442_v24   ;;  %v4678_v4 = vpop.f32.mrf.mxu0 }
 0x2cb   : > { %5641 = vst [vmem:[#allocation95_spill] sm:$0xff] %v4678_v4  ;;  %v4703_v16 = vpop.f32.mrf.mxu1 }
 0x2cc   : > { %1695 = vperm.xlu0 %3305, %v4498_v38   ;;  %v4687_v63 = vpop.f32.mrf.mxu0 }
 0x2cd   : > { %v1823_v61 = vpop.permute.xlu1 %1822  ;;  %v1827_v0 = vpop.permute.xlu0 %1826 }
 0x2ce   : > { %3282 = vset.pattern.permute.xlu1 %v5635_v50  ;;  %v4696_v37 = vpop.f32.mrf.mxu0  ;;  %v1277_v58 = vpop.f32.mrf.mxu1 }
 0x2cf   : > { %1640 = vperm.xlu1 %3282, %v4446_v25   ;;  %5644 = vst [vmem:[#allocation96_spill] sm:$0xff] %v4696_v37 }
 0x2d0   : > { %3309 = vset.pattern.permute.xlu0 %v5639_v43  ;;  %v4707_v5 = vpop.f32.mrf.mxu0 }
 0x2d1   : > { %v4680_v59 = vpop.permute.xlu0 %1818  ;;  %1894 = vperm.xlu0 %3309, %v4498_v38  }
 0x2d2   : > { %v2015_v1 = vpop.permute.xlu1 %2014  ;;  %v4711_v13 = vpop.f32.mrf.mxu0 }
 0x2d3   : > { %3284 = vset.pattern.permute.xlu1 %v5642_v52 }
 0x2d4   : > { %2042 = vperm.xlu1 %3284, %v4446_v25   ;;  %v4717_v8 = vpop.f32.mrf.mxu0 }
 0x2d5   : > { %3310 = vset.pattern.permute.xlu0 %v5642_v52 }
 0x2d6   : > { %2086 = vperm.xlu0 %3310, %v4498_v38   ;;  %v4693_v56 = vpop.permute.xlu0 %2010  ;;  %v4725_v4 = vpop.f32.mrf.mxu0 }
 0x2d7   : > { %v2207_v12 = vpop.permute.xlu1 %2206 }
 0x2d8   : > { %3285 = vset.pattern.permute.xlu1 %v5643_v53 }
 0x2d9   : > { %2234 = vperm.xlu1 %3285, %v4446_v25  }
 0x2da   : > { %3312 = vset.pattern.permute.xlu0 %v5639_v43 }
 0x2db   : > { %1906 = vperm.xlu0 %3312, %v4505_v39   ;;  %v4701_v54 = vpop.permute.xlu0 %1625 }
 0x2dc   : > { %v4705_v40 = vpop.permute.xlu1 %1814 }
 0x2dd   : > { %5645 = vst [vmem:[#allocation97_spill] sm:$0xff] %v4705_v40  ;;  %3287 = vset.pattern.permute.xlu1 %v5639_v43  ;;  %v4721_v40 = vpop.f32.mrf.mxu1 }
 0x2de   : > { %1870 = vperm.xlu1 %3287, %v4450_v26  }
 0x2df   : > { %3313 = vset.pattern.permute.xlu0 %v5642_v52  ;;  %v4714_v25 = vpop.permute.xlu0 %1615 }
 0x2e0   : > { %5646 = vst [vmem:[#allocation98_spill] sm:$0xff] %v4714_v25  ;;  %2098 = vperm.xlu0 %3313, %v4505_v39   ;;  %v4731_v25 = vpop.f32.mrf.mxu1 }
 0x2e1   : > { %v4719_v60 = vpop.permute.xlu1 %2006  ;;  %5648 = vst [vmem:[#allocation100_spill] sm:$0xff] %v4731_v25 }
 0x2e2   : > { %5647 = vst [vmem:[#allocation99_spill] sm:$0xff] %v4719_v60  ;;  %3288 = vset.pattern.permute.xlu1 %v5642_v52  ;;  %v4734_v60 = vpop.f32.mrf.mxu0  ;;  %v4740_v3 = vpop.f32.mrf.mxu1 }
 0x2e3   : > { %2062 = vperm.xlu1 %3288, %v4450_v26   ;;  %5649 = vst [vmem:[#allocation101_spill] sm:$0xff] %v4734_v60  ;;  %5650 = vst [vmem:[#allocation102_spill] sm:$0xff] %v4740_v3  ;;  %v2123_v60 = vmul.f32 %v2015_v1, %v4644_v57 }
 0x2e4   : > { %3317 = vset.pattern.permute.xlu0 %v5635_v50  ;;  %v1843_v37 = vpop.permute.xlu0 %1842  ;;  %v4747_v41 = vpop.f32.mrf.mxu0 }
 0x2e5   : > { %1725 = vperm.xlu0 %3317, %v4516_v42   ;;  %v4729_v45 = vmul.f32 %v1843_v37, %v1277_v58  ;;  %v1739_v58 = vmul.f32 %v4649_v10, %v4604_v6  ;;  %v1931_v37 = vmul.f32 %v1823_v61, %v4615_v17  ;;  %5651 = vst [vmem:[#allocation103_spill] sm:$0xff] %v4747_v41  ;;  %v4754_v25 = vpop.f32.mrf.mxu1 }
 0x2e6   : > { %v1611_v21 = vpop.permute.xlu1 %1610  ;;  %v2315_v6 = vmul.f32 %v2207_v12, %v4652_v55 }
 0x2e7   : > { %3289 = vset.pattern.permute.xlu1 %v5643_v53  ;;  %v1740_v7 = vmul.f32 %v1611_v21, %v4626_v27  ;;  %v1963_v61 = vadd.f32 %v1931_v37, %v1739_v58  ;;  %v4761_v27 = vpop.f32.mrf.mxu0 }
 0x2e8   : > { %2254 = vperm.xlu1 %3289, %v4450_v26   ;;  %v4737_v9 = vpop.permute.xlu0 %1834  ;;  %v1932_v26 = vmul.f32 %v1827_v0, %v4638_v28 }
 0x2e9   : > { %3318 = vset.pattern.permute.xlu0 %v5639_v43  ;;  %v2155_v57 = vadd.f32 %v2123_v60, %v1963_v61  ;;  %v1930_v60 = vmul.f32 %v4680_v59, %v4595_v2  ;;  %v2122_v61 = vmul.f32 %v4693_v56, %v4624_v22 }
 0x2ea   : > { %1918 = vperm.xlu0 %3318, %v4516_v42   ;;  %v1964_v17 = vadd.f32 %v1932_v26, %v1740_v7  ;;  %v4770_v7 = vpop.f32.mrf.mxu0 }
 0x2eb   : > { %v2019_v46 = vpop.permute.xlu1 %2018  ;;  %v4765_v21 = vadd.f32 %v2315_v6, %v2155_v57 }
 0x2ec   : > { %3291 = vset.pattern.permute.xlu1 %v5635_v50  ;;  %v2124_v3 = vmul.f32 %v2019_v46, %v4660_v47  ;;  %v1291_v47 = vpop.f32.mrf.mxu1  ;;  %v4780_v26 = vpop.f32.mrf.mxu0 }
 0x2ed   : > { %1670 = vperm.xlu1 %3291, %v4461_v30   ;;  %v4757_v10 = vpop.permute.xlu0 %2026  ;;  %5652 = vst [vmem:[#allocation104_spill] sm:$0xff] %v4765_v21 }
 0x2ee   : > { %3319 = vset.pattern.permute.xlu0 %v5642_v52  ;;  %v2156_v0 = vadd.f32 %v2124_v3, %v1964_v17  ;;  %v4795_v57 = vpop.f32.mrf.mxu0 }
 0x2ef   : > { %2110 = vperm.xlu0 %3319, %v4516_v42  }
 0x2f0   : > { %v2211_v28 = vpop.permute.xlu1 %2210 }
 0x2f1   : > { %v2316_v46 = vmul.f32 %v2211_v28, %v4666_v49  ;;  %1660 = vperm.xlu1 %3291, %v4466_v31   ;;  %v1293_v49 = vpop.f32.mrf.mxu1 }
 0x2f2   : > { %v1646_v1 = vpop.permute.xlu0 %1645 }
 0x2f3   : > { %v4767_v41 = vadd.f32 %v2316_v46, %v2156_v0  ;;  %3320 = vset.pattern.permute.xlu0 %v5635_v50  ;;  %v1747_v58 = vmul.f32 %v1646_v1, %v1291_v47  ;;  %v4793_v2 = vpop.f32.mrf.mxu1  ;;  %v1488_v47 = vpop.f32.mrf.mxu0 }
 0x2f4   : > { %1715 = vperm.xlu0 %3320, %v4523_v44  }
 0x2f5   : > { %5653 = vst [vmem:[#allocation105_spill] sm:$0xff] %v4767_v41  ;;  %v1601_v3 = vpop.permute.xlu1 %1600  ;;  %3293 = vset.pattern.permute.xlu1 %v5639_v43  ;;  %v4799_v56 = vpop.f32.mrf.mxu1 }
 0x2f6   : > { %v1738_v12 = vmul.f32 %v1601_v3, %v4585_v62  ;;  %1866 = vperm.xlu1 %3293, %v4466_v31   ;;  %v4807_v3 = vpop.f32.mrf.mxu0 }
 0x2f7   : > { %v1855_v37 = vpop.permute.xlu0 %1854  ;;  %v1301_v22 = vpop.f32.mrf.mxu1  ;;  %5656 = vst [vmem:[#allocation108_spill] sm:$0xff] %v4807_v3 }
 0x2f8   : > { %v1962_v6 = vadd.f32 %v1930_v60, %v1738_v12  ;;  %3329 = vset.pattern.permute.xlu0 %v5639_v43  ;;  %v1939_v17 = vmul.f32 %v1855_v37, %v1293_v49 }
 0x2f9   : > { %1914 = vperm.xlu0 %3329, %v4538_v48   ;;  %v1303_v49 = vpop.f32.mrf.mxu1 }
 0x2fa   : > { %v4786_v28 = vpop.permute.xlu1 %2202  ;;  %v4788_v59 = vadd.f32 %v2122_v61, %v1962_v6  ;;  %1886 = vperm.xlu1 %3293, %v4471_v32   ;;  %v4791_v62 = vadd.f32 %v1939_v17, %v1747_v58  ;;  %v4812_v58 = vpop.f32.mrf.mxu0 }
 0x2fb   : > { %5654 = vst [vmem:[#allocation106_spill] sm:$0xff] %v4786_v28  ;;  %5657 = vst [vmem:[#allocation109_spill] sm:$0xff] %v4812_v58  ;;  %v4817_v61 = vpop.f32.mrf.mxu1 }
 0x2fc   : > { %5655 = vst [vmem:[#allocation107_spill] sm:$0xff] %v4788_v59  ;;  %v4797_v0 = vpop.permute.xlu0 %1635  ;;  %v4821_v17 = vpop.f32.mrf.mxu0 }
 0x2fd   : > { %3332 = vset.pattern.permute.xlu0 %v5642_v52  ;;  %5658 = vst [vmem:[#allocation110_spill] sm:$0xff] %v4821_v17  ;;  %v4825_v21 = vpop.f32.mrf.mxu1 }
 0x2fe   : > { %3295 = vset.pattern.permute.xlu1 %v5642_v52  ;;  %2054 = vperm.xlu0 %3332, %v4456_v29  }
 0x2ff   : > { %v1839_v46 = vpop.permute.xlu1 %1838  ;;  %2078 = vperm.xlu1 %3295, %v4471_v32  }
 0x301   : > { %v4805_v1 = vpop.permute.xlu0 %2038 }
 0x302   : > { %1994 = vperm.xlu0 %3332, %v4405_v11  }
 0x303   : > { %3296 = vset.pattern.permute.xlu1 %v5643_v53 }
 0x304   : > { %v2031_v60 = vpop.permute.xlu1 %2030  ;;  %2270 = vperm.xlu1 %3296, %v4471_v32   ;;  %v4830_v32 = vpop.f32.mrf.mxu0 }
 0x305   : > { %v2051_v12 = vpop.permute.xlu0 %2050  ;;  %5659 = vst [vmem:[#allocation111_spill] sm:$0xff] %v4830_v32 }
 0x306   : > { %3334 = vset.pattern.permute.xlu0 %v5643_v53  ;;  %v4815_v37 = vmul.f32 %v2051_v12, %v1488_v47  ;;  %v4838_v17 = vpop.f32.mrf.mxu0 }
 0x307   : > { %2242 = vperm.xlu0 %3334, %v4442_v24   ;;  %v1311_v24 = vpop.f32.mrf.mxu1  ;;  %5661 = vst [vmem:[#allocation113_spill] sm:$0xff] %v4838_v17 }
 0x308   : > { %2262 = vperm.xlu1 %3296, %v4477_v33  }
 0x309   : > { %v2223_v6 = vpop.permute.xlu1 %2222  ;;  %v4840_v41 = vpop.f32.mrf.mxu1 }
 0x30a   : > { %v4823_v55 = vpop.permute.xlu0 %1850 }
 0x30b   : > { %2230 = vperm.xlu0 %3334, %v4439_v23   ;;  %v4847_v32 = vpop.f32.mrf.mxu1 }
 0x30c   : > { %3299 = vset.pattern.permute.xlu1 %v5635_v50 }
 0x30d   : > { %1690 = vperm.xlu1 %3299, %v4481_v34   ;;  %v1317_v29 = vpop.f32.mrf.mxu1 }
 0x30e   : > { %v4832_v47 = vpop.permute.xlu1 %1830 }
 0x30f   : > { %5660 = vst [vmem:[#allocation112_spill] sm:$0xff] %v4832_v47  ;;  %2290 = vperm.xlu0 %3334, %v4505_v39   ;;  %v1666_v33 = vpop.permute.xlu0 %1665  ;;  %v2127_v47 = vmul.f32 %v2031_v60, %v4707_v5  ;;  %v2126_v60 = vmul.f32 %v4757_v10, %v4687_v63 }
 0x310   : > { %v4835_v12 = vmul.f32 %v1666_v33, %v1311_v24  ;;  %v4850_v33 = vpop.f32.mrf.mxu0 }
 0x311   : > { %1680 = vperm.xlu1 %3299, %v4486_v35  }
 0x312   : > { %v4857_v28 = vpop.f32.mrf.mxu0 }
 0x313   : > { %v4842_v23 = vpop.permute.xlu1 %2022  ;;  %2214 = vperm.xlu0 %3334, %v4426_v18   ;;  %v1656_v58 = vpop.permute.xlu0 %1655 }
 0x314   : > { %5662 = vst [vmem:[#allocation114_spill] sm:$0xff] %v4842_v23  ;;  %v1749_v24 = vmul.f32 %v1656_v58, %v1301_v22  ;;  %v1935_v22 = vmul.f32 %v1839_v46, %v4691_v20 }
 0x315   : > { %3302 = vset.pattern.permute.xlu1 %v5639_v43 }
 0x316   : > { %1882 = vperm.xlu1 %3302, %v4486_v35  }
 0x317   : > { %2274 = vperm.xlu0 %3334, %v4481_v34   ;;  %v1743_v34 = vmul.f32 %v4701_v54, %v4683_v51  ;;  %v2319_v51 = vmul.f32 %v2223_v6, %v4711_v13 }
 0x318   : > { %v1631_v11 = vpop.permute.xlu1 %1630  ;;  %v1863_v17 = vpop.permute.xlu0 %1862 }
 0x319   : > { %v1941_v59 = vmul.f32 %v1863_v17, %v1303_v49  ;;  %v1744_v58 = vmul.f32 %v1631_v11, %v4703_v16 }
 0x31a   : > { %3303 = vset.pattern.permute.xlu1 %v5642_v52 }
 0x31b   : > { %2074 = vperm.xlu1 %3303, %v4486_v35   ;;  %2198 = vperm.xlu0 %3334, %v4410_v14   ;;  %v4855_v18 = vadd.f32 %v1941_v59, %v1749_v24  ;;  %v1508_v14 = vpop.f32.mrf.mxu0  ;;  %v1967_v59 = vadd.f32 %v1935_v22, %v1743_v34  ;;  %v1968_v54 = vadd.f32 %v4729_v45, %v1744_v58 }
 0x31c   : > { %v1875_v23 = vpop.permute.xlu0 %1874 }
 0x31d   : > { %5663 = vst [vmem:[#allocation115_spill] sm:$0xff] %v4855_v18  ;;  %v2035_v49 = vpop.permute.xlu1 %2034  ;;  %v4863_v17 = vmul.f32 %v1875_v23, %v1317_v29  ;;  %v2159_v20 = vadd.f32 %v2127_v47, %v1967_v59  ;;  %v1321_v23 = vpop.f32.mrf.mxu1 }
 0x31e   : > { %v2128_v3 = vmul.f32 %v2035_v49, %v4717_v8 }
 0x31f   : > { %3304 = vset.pattern.permute.xlu1 %v5643_v53  ;;  %2258 = vperm.xlu0 %3334, %v4461_v30   ;;  %v4877_v30 = vadd.f32 %v2319_v51, %v2159_v20 }
 0x320   : > { %2266 = vperm.xlu1 %3304, %v4486_v35   ;;  %v2160_v5 = vadd.f32 %v2128_v3, %v1968_v54  ;;  %v1934_v3 = vmul.f32 %v4737_v9, %v4674_v19  ;;  %v4899_v19 = vpop.f32.mrf.mxu0 }
 0x321   : > { %v2067_v11 = vpop.permute.xlu0 %2066  ;;  %5664 = vst [vmem:[#allocation116_spill] sm:$0xff] %v4877_v30 }
 0x322   : > { %v2227_v16 = vpop.permute.xlu1 %2226  ;;  %v4872_v29 = vmul.f32 %v2067_v11, %v1508_v14  ;;  %v1514_v59 = vpop.f32.mrf.mxu0 }
 0x323   : > { %v2320_v8 = vmul.f32 %v2227_v16, %v4725_v4  ;;  %2250 = vperm.xlu0 %3334, %v4466_v31  }
 0x324   : > { %3306 = vset.pattern.permute.xlu1 %v5639_v43 }
 0x325   : > { %v4879_v35 = vadd.f32 %v2320_v8, %v2160_v5  ;;  %1902 = vperm.xlu1 %3306, %v4492_v36   ;;  %v5666_v8 = vld [vmem:[#allocation100_spill] sm:$0xff] }
 0x326   : > { %v4882_v13 = vpop.permute.xlu0 %1685 }
 0x327   : > { %5665 = vst [vmem:[#allocation117_spill] sm:$0xff] %v4879_v35  ;;  %v1621_v46 = vpop.permute.xlu1 %1620 }
 0x328   : > { %v1742_v4 = vmul.f32 %v1621_v46, %v4668_v15  ;;  %v1323_v15 = vpop.f32.mrf.mxu1 }
 0x329   : > { %3307 = vset.pattern.permute.xlu1 %v5642_v52 }
 0x32a   : > { %v1966_v6 = vadd.f32 %v1934_v3, %v1742_v4  ;;  %2094 = vperm.xlu1 %3307, %v4492_v36   ;;  %v1676_v47 = vpop.permute.xlu0 %1675  ;;  %v5667_v3 = vld [vmem:[#allocation58_spill] sm:$0xff] }
 0x32b   : > { %v1753_v22 = vmul.f32 %v1676_v47, %v1321_v23 }
 0x32c   : > { %v4893_v24 = vpop.permute.xlu1 %2218  ;;  %v4895_v34 = vadd.f32 %v2126_v60, %v1966_v6 }
 0x32e   : > { %3308 = vset.pattern.permute.xlu1 %v5643_v53 }
 0x32f   : > { %2286 = vperm.xlu1 %3308, %v4492_v36   ;;  %v1879_v9 = vpop.permute.xlu0 %1878 }
 0x330   : > { %v1945_v58 = vmul.f32 %v1879_v9, %v1323_v15 }
 0x331   : > { %v2047_v63 = vpop.permute.xlu1 %2046 }
 0x332   : > { %v1977_v10 = vadd.f32 %v1945_v58, %v1753_v22  ;;  %v2131_v49 = vmul.f32 %v2047_v63, %v4780_v26  ;;  %v1938_v58 = vmul.f32 %v4823_v55, %v4754_v25  ;;  %v5669_v63 = vld [vmem:[#allocation102_spill] sm:$0xff] }
 0x333   : > { %2278 = vperm.xlu1 %3308, %v4498_v38   ;;  %v1745_v38 = vmul.f32 %v4797_v0, %v4721_v40 }
 0x334   : > { %v2071_v14 = vpop.permute.xlu0 %2070  ;;  %v2163_v11 = vadd.f32 %v2131_v49, %v4791_v62  ;;  %v5668_v62 = vld [vmem:[#allocation101_spill] sm:$0xff] }
 0x335   : > { %v2137_v51 = vmul.f32 %v2071_v14, %v1514_v59 }
 0x336   : > { %v2239_v54 = vpop.permute.xlu1 %2238 }
 0x337   : > { %v2323_v16 = vmul.f32 %v2239_v54, %v4795_v57  ;;  %3311 = vset.pattern.permute.xlu1 %v5635_v50  ;;  %v4906_v36 = vadd.f32 %v2137_v51, %v1977_v10  ;;  %v2129_v57 = vmul.f32 %v4805_v1, %v5668_v62 }
 0x338   : > { %1710 = vperm.xlu1 %3311, %v4505_v39  }
 0x339   : > { %v4909_v20 = vadd.f32 %v2323_v16, %v2163_v11  ;;  %v4911_v5 = vpop.permute.xlu0 %1890 }
 0x33b   : > { %v1847_v26 = vpop.permute.xlu1 %1846 }
 0x33c   : > { %v1937_v46 = vmul.f32 %v1847_v26, %v5666_v8  ;;  %1700 = vperm.xlu1 %3311, %v5667_v3  }
 0x33e   : > { %v1969_v4 = vadd.f32 %v1937_v46, %v1745_v38  ;;  %v4919_v60 = vpop.permute.xlu0 %2082 }
 0x340   : > { %v1651_v6 = vpop.permute.xlu1 %1650  ;;  %3314 = vset.pattern.permute.xlu1 %v5639_v43  ;;  %v4922_v39 = vadd.f32 %v2129_v57, %v1969_v4 }
 0x341   : > { %1898 = vperm.xlu1 %3314, %v5667_v3   ;;  %v1748_v0 = vmul.f32 %v1651_v6, %v4793_v2 }
 0x343   : > { %v4925_v47 = vpop.permute.xlu0 %1705 }
 0x345   : > { %v1859_v40 = vpop.permute.xlu1 %1858  ;;  %3315 = vset.pattern.permute.xlu1 %v5642_v52 }
 0x346   : > { %v1940_v23 = vmul.f32 %v1859_v40, %v4799_v56  ;;  %2090 = vperm.xlu1 %3315, %v5667_v3  }
 0x347   : > { %v4931_v1 = vpop.permute.xlu0 %1695 }
 0x348   : > { %v1972_v22 = vadd.f32 %v1940_v23, %v1748_v0  ;;  %v1516_v0 = vpop.f32.mrf.mxu0 }
 0x34a   : > { %v1641_v9 = vpop.permute.xlu1 %1640  ;;  %3316 = vset.pattern.permute.xlu1 %v5643_v53  ;;  %v4935_v15 = vadd.f32 %v4815_v37, %v1972_v22 }
 0x34b   : > { %v1746_v10 = vmul.f32 %v1641_v9, %v5669_v63  ;;  %2282 = vperm.xlu1 %3316, %v5667_v3   ;;  %v5670_v3 = vld [vmem:[#allocation61_spill] sm:$0xff] }
 0x34c   : > { %v4941_v2 = vpop.permute.xlu0 %1894 }
 0x34d   : > { %v1970_v56 = vadd.f32 %v1938_v58, %v1746_v10 }
 0x34f   : > { %v2043_v49 = vpop.permute.xlu1 %2042  ;;  %2302 = vperm.xlu1 %3316, %v4516_v42  }
 0x350   : > { %v2130_v14 = vmul.f32 %v2043_v49, %v4761_v27 }
 0x351   : > { %v4945_v59 = vpop.permute.xlu0 %2086 }
 0x352   : > { %v2162_v51 = vadd.f32 %v2130_v14, %v1970_v56 }
 0x353   : > { %3321 = vset.pattern.permute.xlu1 %v5639_v43 }
 0x354   : > { %v2235_v37 = vpop.permute.xlu1 %2234  ;;  %1910 = vperm.xlu1 %3321, %v4523_v44  }
 0x355   : > { %v2322_v25 = vmul.f32 %v2235_v37, %v4770_v7 }
 0x356   : > { %v4950_v55 = vpop.permute.xlu0 %1906 }
 0x357   : > { %v4952_v54 = vadd.f32 %v2322_v25, %v2162_v51 }
 0x358   : > { %3322 = vset.pattern.permute.xlu1 %v5642_v52 }
 0x359   : > { %v1871_v11 = vpop.permute.xlu1 %1870  ;;  %2102 = vperm.xlu1 %3322, %v4523_v44  }
 0x35a   : > { %v1943_v42 = vmul.f32 %v1871_v11, %v4840_v41 }
 0x35b   : > { %v4957_v27 = vpop.permute.xlu0 %2098 }
 0x35c   : > { %v1975_v16 = vadd.f32 %v1943_v42, %v4835_v12 }
 0x35d   : > { %3323 = vset.pattern.permute.xlu1 %v5643_v53 }
 0x35e   : > { %v2063_v26 = vpop.permute.xlu1 %2062  ;;  %2294 = vperm.xlu1 %3323, %v4523_v44  }
 0x35f   : > { %v2135_v7 = vmul.f32 %v2063_v26, %v4850_v33  ;;  %v4975_v33 = vpop.f32.mrf.mxu1 }
 0x360   : > { %v4963_v38 = vpop.permute.xlu0 %1725 }
 0x361   : > { %v2167_v8 = vadd.f32 %v2135_v7, %v1975_v16 }
 0x362   : > { %3324 = vset.pattern.permute.xlu1 %v5635_v50 }
 0x363   : > { %v2255_v46 = vpop.permute.xlu1 %2254  ;;  %1730 = vperm.xlu1 %3324, %v5670_v3  }
 0x364   : > { %v2327_v41 = vmul.f32 %v2255_v46, %v4857_v28  ;;  %v4981_v28 = vpop.f32.mrf.mxu1 }
 0x365   : > { %v4968_v62 = vpop.permute.xlu0 %1918 }
 0x366   : > { %v4970_v12 = vadd.f32 %v2327_v41, %v2167_v8 }
 0x367   : > { %3325 = vset.pattern.permute.xlu1 %v5639_v43 }
 0x368   : > { %5671 = vst [vmem:[#allocation100_spill] sm:$0xff] %v4970_v12  ;;  %v1671_v57 = vpop.permute.xlu1 %1670  ;;  %1922 = vperm.xlu1 %3325, %v5670_v3  }
 0x369   : > { %v1752_v44 = vmul.f32 %v1671_v57, %v4847_v32  ;;  %v1331_v32 = vpop.f32.mrf.mxu1 }
 0x36a   : > { %v4977_v4 = vpop.permute.xlu0 %2110  ;;  %v1755_v63 = vmul.f32 %v4882_v13, %v1331_v32 }
 0x36b   : > { %v1976_v6 = vadd.f32 %v4863_v17, %v1752_v44  ;;  %v4991_v17 = vpop.f32.mrf.mxu0  ;;  %v1333_v56 = vpop.f32.mrf.mxu1 }
 0x36c   : > { %v1661_v40 = vpop.permute.xlu1 %1660  ;;  %3326 = vset.pattern.permute.xlu1 %v5642_v52 }
 0x36d   : > { %2114 = vperm.xlu1 %3326, %v5670_v3   ;;  %v4985_v43 = vadd.f32 %v4872_v29, %v1976_v6  ;;  %v1750_v9 = vmul.f32 %v1661_v40, %v4817_v61  ;;  %v5000_v14 = vpop.f32.mrf.mxu0  ;;  %v5677_v40 = vld [vmem:[#allocation53_spill] sm:$0xff] }
 0x36f   : > { %v4987_v23 = vpop.permute.xlu0 %1715 }
 0x371   : > { %v1867_v22 = vpop.permute.xlu1 %1866  ;;  %3327 = vset.pattern.permute.xlu1 %v5643_v53 }
 0x372   : > { %v1942_v58 = vmul.f32 %v1867_v22, %v4825_v21  ;;  %2306 = vperm.xlu1 %3327, %v5670_v3   ;;  %v1524_v21 = vpop.f32.mrf.mxu0  ;;  %v5676_v3 = vld [vmem:[#allocation108_spill] sm:$0xff] }
 0x374   : > { %v4996_v10 = vadd.f32 %v1942_v58, %v1750_v9  ;;  %v4998_v29 = vpop.permute.xlu0 %1914  ;;  %v1526_v16 = vpop.f32.mrf.mxu0  ;;  %v5679_v58 = vld [vmem:[#allocation103_spill] sm:$0xff] }
 0x375   : > { %v1887_v49 = vpop.permute.xlu1 %1886 }
 0x376   : > { %5672 = vst [vmem:[#allocation58_spill] sm:$0xff] %v4996_v10  ;;  %v1947_v51 = vmul.f32 %v1887_v49, %v1333_v56  ;;  %3328 = vset.pattern.permute.xlu1 %v5635_v50  ;;  %v1335_v50 = vpop.f32.mrf.mxu1  ;;  %v1528_v56 = vpop.f32.mrf.mxu0 }
 0x377   : > { %1720 = vperm.xlu1 %3328, %v4538_v48  }
 0x378   : > { %v1979_v61 = vadd.f32 %v1947_v51, %v1755_v63  ;;  %v1337_v32 = vpop.f32.mrf.mxu1  ;;  %v5680_v51 = vld [vmem:[#allocation91_spill] sm:$0xff] }
 0x379   : > { %v5004_v37 = vpop.permute.xlu0 %2054 }
 0x37a   : > { %5673 = vst [vmem:[#allocation101_spill] sm:$0xff] %v5004_v37  ;;  %v2079_v25 = vpop.permute.xlu1 %2078 }
 0x37b   : > { %v2139_v11 = vmul.f32 %v2079_v25, %v1524_v21  ;;  %3330 = vset.pattern.permute.xlu1 %v5642_v52 }
 0x37c   : > { %2106 = vperm.xlu1 %3330, %v4538_v48  }
 0x37d   : > { %v2171_v13 = vadd.f32 %v2139_v11, %v1979_v61  ;;  %v5008_v42 = vpop.permute.xlu0 %1994  ;;  %v5681_v61 = vld [vmem:[#allocation112_spill] sm:$0xff]  ;;  %v5682_v11 = vld [vmem:[#allocation55_spill] sm:$0xff] }
 0x37e   : > { %5674 = vst [vmem:[#allocation102_spill] sm:$0xff] %v5008_v42 }
 0x37f   : > { %v2271_v26 = vpop.permute.xlu1 %2270 }
 0x380   : > { %v2331_v7 = vmul.f32 %v2271_v26, %v1526_v16  ;;  %3331 = vset.pattern.permute.xlu1 %v5643_v53 }
 0x381   : > { %2298 = vperm.xlu1 %3331, %v4538_v48  }
 0x382   : > { %v5012_v8 = vadd.f32 %v2331_v7, %v2171_v13  ;;  %v2243_v46 = vpop.permute.xlu0 %2242  ;;  %v5684_v13 = vld [vmem:[#allocation98_spill] sm:$0xff] }
 0x383   : > { %v2324_v41 = vmul.f32 %v2243_v46, %v5676_v3  ;;  %v2263_v57 = vpop.permute.xlu1 %2262  ;;  %v5685_v7 = vld [vmem:[#allocation94_spill] sm:$0xff] }
 0x384   : > { %5675 = vst [vmem:[#allocation61_spill] sm:$0xff] %v5012_v8  ;;  %v2329_v44 = vmul.f32 %v2263_v57, %v1516_v0  ;;  %v1933_v0 = vmul.f32 %v5681_v61, %v5680_v51  ;;  %v5686_v46 = vld [vmem:[#allocation114_spill] sm:$0xff]  ;;  %v5690_v61 = vld [vmem:[#allocation97_spill] sm:$0xff] }
 0x385   : > { %v5016_v6 = vadd.f32 %v2324_v41, %v4935_v15  ;;  %2190 = vperm.xlu1 %3331, %v5677_v40   ;;  %v1948_v15 = vmul.f32 %v4911_v5, %v1337_v32  ;;  %v2125_v3 = vmul.f32 %v5686_v46, %v5685_v7  ;;  %v2140_v41 = vmul.f32 %v4919_v60, %v1528_v56  ;;  %v5687_v40 = vld [vmem:[#allocation96_spill] sm:$0xff]  ;;  %v5689_v51 = vld [vmem:[#allocation74_spill] sm:$0xff] }
 0x386   : > { %v5020_v22 = vadd.f32 %v2329_v44, %v4906_v36  ;;  %v2231_v9 = vpop.permute.xlu0 %2230  ;;  %v5683_v36 = vld [vmem:[#allocation89_spill] sm:$0xff]  ;;  %v2318_v32 = vmul.f32 %v4893_v24, %v5687_v40  ;;  %v1530_v24 = vpop.f32.mrf.mxu0  ;;  %v5695_v7 = vld [vmem:[#allocation92_spill] sm:$0xff] }
 0x387   : > { %v2321_v63 = vmul.f32 %v2231_v9, %v5679_v58  ;;  %v1741_v16 = vmul.f32 %v5684_v13, %v5683_v36  ;;  %v5693_v13 = vld [vmem:[#allocation54_spill] sm:$0xff] }
 0x388   : > { %5678 = vst [vmem:[#allocation108_spill] sm:$0xff] %v5020_v22  ;;  %v1691_v49 = vpop.permute.xlu1 %1690 }
 0x389   : > { %v5029_v21 = vadd.f32 %v2321_v63, %v4922_v39  ;;  %v1756_v25 = vmul.f32 %v1691_v49, %v1335_v50  ;;  %2194 = vperm.xlu1 %3331, %v5682_v11   ;;  %v5041_v39 = vpop.f32.mrf.mxu1  ;;  %v1965_v50 = vadd.f32 %v1933_v0, %v1741_v16  ;;  %v5688_v49 = vld [vmem:[#allocation95_spill] sm:$0xff]  ;;  %v5694_v16 = vld [vmem:[#allocation72_spill] sm:$0xff] }
 0x38a   : > { %v5034_v26 = vpop.permute.xlu0 %2290  ;;  %v1737_v46 = vmul.f32 %v5695_v7, %v5694_v16  ;;  %v5701_v16 = vld [vmem:[#allocation83_spill] sm:$0xff] }
 0x38b   : > { %v1980_v5 = vadd.f32 %v1948_v15, %v1756_v25  ;;  %v2157_v63 = vadd.f32 %v2125_v3, %v1965_v50  ;;  %v5048_v56 = vpop.f32.mrf.mxu1  ;;  %v1929_v15 = vmul.f32 %v5690_v61, %v5689_v51  ;;  %v5053_v25 = vadd.f32 %v2318_v32, %v4895_v34  ;;  %v5696_v3 = vld [vmem:[#allocation80_spill] sm:$0xff] }
 0x38c   : > { %v1681_v44 = vpop.permute.xlu1 %1680 }
 0x38d   : > { %3333 = vset.pattern.permute.xlu1 %v5642_v52  ;;  %v2172_v9 = vadd.f32 %v2140_v41, %v1980_v5  ;;  %5691 = vst [vmem:[#allocation53_spill] sm:$0xff] %v5053_v25  ;;  %v1754_v52 = vmul.f32 %v1681_v44, %v4975_v33  ;;  %v5697_v41 = vld [vmem:[#allocation99_spill] sm:$0xff]  ;;  %v5066_v32 = vpop.f32.mrf.mxu1  ;;  %v5699_v44 = vld [vmem:[#allocation106_spill] sm:$0xff] }
 0x38e   : > { %v2215_v58 = vpop.permute.xlu0 %2214  ;;  %2058 = vperm.xlu1 %3333, %v4466_v31   ;;  %v2121_v5 = vmul.f32 %v5697_v41, %v5696_v3  ;;  %v5698_v33 = vld [vmem:[#allocation87_spill] sm:$0xff] }
 0x38f   : > { %v2317_v60 = vmul.f32 %v2215_v58, %v5688_v49  ;;  %v1961_v58 = vadd.f32 %v1929_v15, %v1737_v46  ;;  %v5072_v49 = vpop.f32.mrf.mxu0 }
 0x391   : > { %v5055_v0 = vadd.f32 %v2317_v60, %v2157_v63  ;;  %v1883_v11 = vpop.permute.xlu1 %1882  ;;  %v2153_v61 = vadd.f32 %v2121_v5, %v1961_v58  ;;  %v5085_v7 = vpop.f32.mrf.mxu0 }
 0x392   : > { %v1946_v36 = vmul.f32 %v1883_v11, %v4981_v28  ;;  %v2275_v31 = vpop.permute.xlu0 %2274  ;;  %1990 = vperm.xlu1 %3333, %v5693_v13   ;;  %v2314_v28 = vmul.f32 %v5699_v44, %v5698_v33 }
 0x393   : > { %5692 = vst [vmem:[#allocation103_spill] sm:$0xff] %v5055_v0  ;;  %v2332_v50 = vmul.f32 %v2275_v31, %v1530_v24 }
 0x394   : > { %v1978_v40 = vadd.f32 %v1946_v36, %v1754_v52  ;;  %v5702_v52 = vld [vmem:[#allocation57_spill] sm:$0xff]  ;;  %v5080_v36 = vpop.f32.mrf.mxu1 }
 0x395   : > { %v5070_v63 = vadd.f32 %v2332_v50, %v2172_v9  ;;  %v5703_v9 = vld [vmem:[#allocation107_spill] sm:$0xff] }
 0x396   : > { %v2075_v60 = vpop.permute.xlu1 %2074  ;;  %v2199_v51 = vpop.permute.xlu0 %2198  ;;  %3335 = vset.pattern.permute.xlu1 %v5643_v53  ;;  %v5083_v31 = vadd.f32 %v2314_v28, %v5703_v9 }
 0x397   : > { %5700 = vst [vmem:[#allocation91_spill] sm:$0xff] %v5070_v63  ;;  %v2138_v11 = vmul.f32 %v2075_v60, %v4991_v17  ;;  %v2313_v24 = vmul.f32 %v2199_v51, %v5701_v16  ;;  %2246 = vperm.xlu1 %3335, %v5702_v52   ;;  %v2374_v17 = vlaneseq  ;;  %v1351_v33 = vpop.f32.mrf.mxu1  ;;  %v5096_v28 = vpop.f32.mrf.mxu0  ;;  %v5709_v16 = vld [vmem:[#allocation56_spill] sm:$0xff] }
 0x398   : > { %5704 = vst [vmem:[#allocation112_spill] sm:$0xff] %v5083_v31 }
 0x399   : > { %v2170_v46 = vadd.f32 %v2138_v11, %v1978_v40  ;;  %v5087_v53 = vadd.f32 %v2313_v24, %v2153_v61  ;;  %v5093_v58 = vshrl.u32 %v2374_v17, 7  ;;  %v1353_v9 = vpop.f32.mrf.mxu1 }
 0x39a   : > { %v2259_v3 = vpop.permute.xlu0 %2258 }
 0x39b   : > { %5706 = vst [vmem:[#allocation55_spill] sm:$0xff] %v5087_v53  ;;  %v2328_v5 = vmul.f32 %v2259_v3, %v4899_v19  ;;  %v2267_v50 = vpop.permute.xlu1 %2266  ;;  %2182 = vperm.xlu1 %3335, %v5693_v13   ;;  %v2376_v60 = vadd.s32 8, %v5093_v58  ;;  %v2399_v51 = vsub.s32 1, %v5093_v58  ;;  %v2373_v19 = vld [vmem:[%s421_s4] sm:$0x3]  ;;  %v5108_v13 = vstv %s2865_s22 }
 0x39c   : > { %v2330_v44 = vmul.f32 %v2267_v50, %v5000_v14  ;;  %v2395_v11 = vsub.s32 0, %v5093_v58  ;;  %v1759_v14 = vmul.f32 %v4925_v47, %v1351_v33  ;;  %v2385_v24 = vadd.s32 %v5108_v13, %v5093_v58  ;;  %v5120_v50 = vpop.f32.mrf.mxu0 }
 0x39d   : > { %v5099_v40 = vadd.f32 %v2328_v5, %v4985_v43  ;;  %v2386_v52 = vadd.s32 %v5108_v13, %v2376_v60  ;;  %v2400_v5 = vrot.slane %v2373_v19, %v2399_v51  ;;  %v5710_v60 = vmov 0 }
 0x39e   : > { %v5104_v61 = vadd.f32 %v2330_v44, %v2170_v46  ;;  %v2396_v3 = vrot.slane %v2373_v19, %v2395_v11  ;;  %v5481_v44 = vmov 1.0|1.0   ;;  %v2378_v51 = vadd.s32 24, %v5093_v58  ;;  %v1544_v19 = vpop.f32.mrf.mxu0 }
 0x39f   : > { %5707 = vst [vmem:[#allocation89_spill] sm:$0xff] %v5099_v40  ;;  %2186 = vperm.xlu1 %3335, %v5709_v16   ;;  %vm2402_vm1 = vcmp.eq.s32.totalorder %v2385_v24, %v2400_v5  ;;  %vm2404_vm3 = vcmp.eq.s32.totalorder %v2386_v52, %v2400_v5  ;;  %v2377_v16 = vadd.s32 16, %v5093_v58 }
 0x3a0   : > { %5708 = vst [vmem:[#allocation98_spill] sm:$0xff] %v5104_v61  ;;  %v1903_v46 = vpop.permute.xlu1 %1902  ;;  %vm2401_vm0 = vcmp.eq.s32.totalorder %v2385_v24, %v2396_v3  ;;  %vm2403_vm2 = vcmp.eq.s32.totalorder %v2386_v52, %v2396_v3  ;;  %vm2882_vm4 = vmpackc.low %vm2404_vm3, %vm2402_vm1  ;;  %v2388_v52 = vadd.s32 %v5108_v13, %v2378_v51 }
 0x3a1   : > { %v1951_v47 = vmul.f32 %v1903_v46, %v1353_v9  ;;  %2883 = vmatprep.mubr.msk.bf16.mxu1 %vm2882_vm4, %v5481_v44  ;;  %vm5123_vm5 = vmpackc.low %vm2403_vm2, %vm2401_vm0  ;;  %v2387_v24 = vadd.s32 %v5108_v13, %v2377_v16  ;;  %v1949_v46 = vmul.f32 %v4941_v2, %v5048_v56  ;;  %v5713_v44 = vmov 0 }
 0x3a2   : > { %v5711_v60 = vsel %vm5123_vm5, 4294967295, %v5710_v60  ;;  %vm2408_vm7 = vcmp.eq.s32.totalorder %v2388_v52, %v2400_v5  ;;  %vm2407_vm10 = vcmp.eq.s32.totalorder %v2388_v52, %v2396_v3  ;;  %v5716_v16 = vmov 0 }
 0x3a3   : > { %v1983_v33 = vadd.f32 %v1951_v47, %v1759_v14  ;;  %5712 = vst [vmem:[#allocation94_spill] sm:$0xff] %v5711_v60  ;;  %v1757_v14 = vmul.f32 %v4931_v1, %v5041_v39  ;;  %vm2406_vm6 = vcmp.eq.s32.totalorder %v2387_v24, %v2400_v5  ;;  %vm2405_vm8 = vcmp.eq.s32.totalorder %v2387_v24, %v2396_v3 }
 0x3a4   : > { %vm5135_vm9 = vmpackc.low %vm2408_vm7, %vm2406_vm6  ;;  %v2141_v1 = vmul.f32 %v4945_v59, %v5072_v49  ;;  %v2379_v56 = vadd.s32 32, %v5093_v58  ;;  %v5719_v49 = vmov 0 }
 0x3a5   : > { %v2095_v11 = vpop.permute.xlu1 %2094  ;;  %v5714_v44 = vsel %vm5135_vm9, 4294967295, %v5713_v44  ;;  %vm5139_vm11 = vmpackc.low %vm2407_vm10, %vm2405_vm8  ;;  %v1981_v39 = vadd.f32 %v1949_v46, %v1757_v14  ;;  %v5722_v14 = vmov 0 }
 0x3a6   : > { %v2143_v9 = vmul.f32 %v2095_v11, %v1544_v19  ;;  %5715 = vst [vmem:[#allocation114_spill] sm:$0xff] %v5714_v44  ;;  %v1546_v19 = vpop.f32.mrf.mxu0  ;;  %v5717_v16 = vsel %vm5139_vm11, 4294967295, %v5716_v16  ;;  %v2389_v24 = vadd.s32 %v5108_v13, %v2379_v56 }
 0x3a7   : > { %5718 = vst [vmem:[#allocation96_spill] sm:$0xff] %v5717_v16  ;;  %v2173_v43 = vadd.f32 %v2141_v1, %v1981_v39 }
 0x3a8   : > { %v2175_v47 = vadd.f32 %v2143_v9, %v1983_v33  ;;  %v2380_v33 = vadd.s32 40, %v5093_v58  ;;  %vm2410_vm12 = vcmp.eq.s32.totalorder %v2389_v24, %v2400_v5  ;;  %vm2409_vm14 = vcmp.eq.s32.totalorder %v2389_v24, %v2396_v3 }
 0x3aa   : > { %v2287_v11 = vpop.permute.xlu1 %2286  ;;  %v2390_v52 = vadd.s32 %v5108_v13, %v2380_v33 }
 0x3ab   : > { %v2335_v2 = vmul.f32 %v2287_v11, %v1546_v19  ;;  %v2382_v19 = vadd.s32 56, %v5093_v58 }
 0x3ac   : > { %vm2412_vm13 = vcmp.eq.s32.totalorder %v2390_v52, %v2400_v5  ;;  %vm2411_vm15 = vcmp.eq.s32.totalorder %v2390_v52, %v2396_v3 }
 0x3ad   : > { %v5147_v51 = vadd.f32 %v2335_v2, %v2175_v47  ;;  %vm5154_vm0 = vmpackc.low %vm2412_vm13, %vm2410_vm12  ;;  %v2381_v47 = vadd.s32 48, %v5093_v58  ;;  %v2392_v11 = vadd.s32 %v5108_v13, %v2382_v19  ;;  %v1355_v2 = vpop.f32.mrf.mxu1 }
 0x3ae   : > { %v2279_v9 = vpop.permute.xlu1 %2278  ;;  %v5720_v49 = vsel %vm5154_vm0, 4294967295, %v5719_v49  ;;  %vm5158_vm1 = vmpackc.low %vm2411_vm15, %vm2409_vm14 }
 0x3af   : > { %v2333_v41 = vmul.f32 %v2279_v9, %v5085_v7  ;;  %5721 = vst [vmem:[#allocation95_spill] sm:$0xff] %v5720_v49  ;;  %v5723_v14 = vsel %vm5158_vm1, 4294967295, %v5722_v14  ;;  %v2391_v7 = vadd.s32 %v5108_v13, %v2381_v47  ;;  %vm2416_vm3 = vcmp.eq.s32.totalorder %v2392_v11, %v2400_v5  ;;  %v1357_v13 = vpop.f32.mrf.mxu1  ;;  %v1548_v9 = vpop.f32.mrf.mxu0 }
 0x3b0   : > { %5724 = vst [vmem:[#allocation74_spill] sm:$0xff] %v5723_v14  ;;  %vm2415_vm7 = vcmp.eq.s32.totalorder %v2392_v11, %v2396_v3 }
 0x3b1   : > { %v5152_v59 = vadd.f32 %v2333_v41, %v2173_v43  ;;  %vm2414_vm2 = vcmp.eq.s32.totalorder %v2391_v7, %v2400_v5  ;;  %v5725_v41 = vmov 0  ;;  %vm2413_vm6 = vcmp.eq.s32.totalorder %v2391_v7, %v2396_v3  ;;  %v1361_v5 = vpop.f32.mrf.mxu1  ;;  %v1550_v24 = vpop.f32.mrf.mxu0 }
 0x3b2   : > { %vm5168_vm4 = vmpackc.low %vm2416_vm3, %vm2414_vm2  ;;  %v5728_v43 = vmov 0 }
 0x3b3   : > { %v1711_v46 = vpop.permute.xlu1 %1710  ;;  %v5726_v41 = vsel %vm5168_vm4, 4294967295, %v5725_v41  ;;  %vm5172_vm8 = vmpackc.low %vm2415_vm7, %vm2413_vm6  ;;  %v1363_v47 = vpop.f32.mrf.mxu1 }
 0x3b4   : > { %5727 = vst [vmem:[#allocation97_spill] sm:$0xff] %v5726_v41  ;;  %v5729_v43 = vsel %vm5172_vm8, 4294967295, %v5728_v43  ;;  %v1554_v19 = vpop.f32.mrf.mxu0 }
 0x3b5   : > { %5730 = vst [vmem:[#allocation54_spill] sm:$0xff] %v5729_v43  ;;  %v1365_v7 = vpop.f32.mrf.mxu1 }
 0x3b6   : > { %v1556_v11 = vpop.f32.mrf.mxu0 }
 0x3b7   : > { %v5166_v1 = vpop.permute.xlu1 %1700  ;;  %v1367_v17 = vpop.f32.mrf.mxu1 }
 0x3b8   : > { %v1558_v15 = vpop.f32.mrf.mxu0 }
 0x3b9   : > { %v1371_v45 = vpop.f32.mrf.mxu1 }
 0x3ba   : > { %v1560_v57 = vpop.f32.mrf.mxu0  ;;  %v1763_v16 = vmul.f32 %v4963_v38, %v1371_v45 }
 0x3bb   : > { %v1373_v43 = vpop.f32.mrf.mxu1 }
 0x3bc   : > { %v1899_v39 = vpop.permute.xlu1 %1898  ;;  %v1564_v41 = vpop.f32.mrf.mxu0  ;;  %v1955_v44 = vmul.f32 %v4968_v62, %v1373_v43  ;;  %v1760_v62 = vmul.f32 %v1711_v46, %v1355_v2  ;;  %v5734_v46 = vld [vmem:[#allocation116_spill] sm:$0xff]  ;;  %v5738_v2 = vld [vmem:[#allocation67_spill] sm:$0xff] }
 0x3bd   : > { %v1375_v14 = vpop.f32.mrf.mxu1  ;;  %v2147_v53 = vmul.f32 %v4977_v4, %v1564_v41  ;;  %v5731_v4 = vpack.c.bf16 %v5016_v6, %v4909_v20  ;;  %v2336_v20 = vmul.f32 %v5034_v26, %v1550_v24  ;;  %v1758_v6 = vmul.f32 %v5166_v1, %v5066_v32  ;;  %v5736_v41 = vld [vmem:[#allocation68_spill] sm:$0xff]  ;;  %v5744_v24 = vld [vmem:[#allocation53_spill] sm:$0xff] }
 0x3be   : > { %v1566_v60 = vpop.f32.mrf.mxu0  ;;  %v1987_v40 = vadd.f32 %v1955_v44, %v1763_v16  ;;  %v1952_v44 = vmul.f32 %v4950_v55, %v1357_v13  ;;  %v1950_v55 = vmul.f32 %v1899_v39, %v5080_v36  ;;  %v5737_v39 = vld [vmem:[#allocation86_spill] sm:$0xff] }
 0x3bf   : > { %v1377_v42 = vpop.f32.mrf.mxu1  ;;  %v5740_v13 = vld [vmem:[#allocation70_spill] sm:$0xff] }
 0x3c0   : > { %v1568_v12 = vpop.f32.mrf.mxu0  ;;  %v2179_v37 = vadd.f32 %v2147_v53, %v1987_v40 }
 0x3c1   : > { %v5176_v58 = vpop.permute.xlu1 %2090 }
 0x3c2   : > { %v1570_v10 = vpop.f32.mrf.mxu0 }
 0x3c6   : > { %v5178_v56 = vpop.permute.xlu1 %2282 }
 0x3c7   : > { %v2334_v36 = vmul.f32 %v5178_v56, %v5120_v50  ;;  %v5739_v56 = vld [vmem:[#allocation81_spill] sm:$0xff] }
 0x3ca   : > { %v2303_v33 = vpop.permute.xlu1 %2302 }
 0x3cb   : > { %v2339_v8 = vmul.f32 %v2303_v33, %v1566_v60  ;;  %v5741_v33 = vld [vmem:[#allocation85_spill] sm:$0xff] }
 0x3cd   : > { %v2371_v45 = vadd.f32 %v2339_v8, %v2179_v37 }
 0x3cf   : > { %v1911_v52 = vpop.permute.xlu1 %1910 }
 0x3d4   : > { %v2103_v3 = vpop.permute.xlu1 %2102 }
 0x3d5   : > { %v2145_v37 = vmul.f32 %v2103_v3, %v1554_v19  ;;  %v5748_v3 = vld [vmem:[#allocation91_spill] sm:$0xff] }
 0x3d9   : > { %v2295_v34 = vpop.permute.xlu1 %2294 }
 0x3de   : > { %v1731_v48 = vpop.permute.xlu1 %1730 }
 0x3df   : > { %v1764_v22 = vmul.f32 %v1731_v48, %v1375_v14  ;;  %v5733_v14 = vld [vmem:[#allocation117_spill] sm:$0xff] }
 0x3e0   : > { %v5735_v50 = vpack.c.bf16 %v5733_v14, %v5734_v46  ;;  %v5773_v14 = vld [vmem:[#allocation82_spill] sm:$0xff] }
 0x3e3   : > { %v1923_v49 = vpop.permute.xlu1 %1922 }
 0x3e4   : > { %v1956_v31 = vmul.f32 %v1923_v49, %v1377_v42 }
 0x3e6   : > { %v1988_v63 = vadd.f32 %v1956_v31, %v1764_v22  ;;  %v2144_v22 = vmul.f32 %v4957_v27, %v1548_v9  ;;  %v2142_v27 = vmul.f32 %v5176_v58, %v5096_v28  ;;  %v5732_v28 = vpack.c.bf16 %v4952_v54, %v5029_v21  ;;  %v5742_v54 = vld [vmem:[#allocation76_spill] sm:$0xff]  ;;  %v5743_v21 = vld [vmem:[#allocation90_spill] sm:$0xff] }
 0x3e7   : > { %v1736_v58 = vmul.f32 %v5737_v39, %v5736_v41  ;;  %v1928_v9 = vmul.f32 %v5741_v33, %v5740_v13  ;;  %v5779_v13 = vld [vmem:[#allocation59_spill] sm:$0xff] }
 0x3e8   : > { %v2115_v18 = vpop.permute.xlu1 %2114  ;;  %v5780_v33 = vld [vmem:[#allocation79_spill] sm:$0xff] }
 0x3e9   : > { %v2148_v61 = vmul.f32 %v2115_v18, %v1568_v12  ;;  %v1984_v18 = vadd.f32 %v1952_v44, %v1760_v62  ;;  %v1953_v12 = vmul.f32 %v1911_v52, %v1363_v47  ;;  %v5747_v47 = vld [vmem:[#allocation111_spill] sm:$0xff]  ;;  %v5752_v62 = vld [vmem:[#allocation78_spill] sm:$0xff]  ;;  %v5753_v44 = vld [vmem:[#allocation73_spill] sm:$0xff] }
 0x3eb   : > { %v2180_v25 = vadd.f32 %v2148_v61, %v1988_v63 }
 0x3ed   : > { %v2307_v0 = vpop.permute.xlu1 %2306 }
 0x3ee   : > { %v2340_v30 = vmul.f32 %v2307_v0, %v1570_v10  ;;  %v1761_v10 = vmul.f32 %v4987_v23, %v1361_v5  ;;  %v2337_v0 = vmul.f32 %v2295_v34, %v1556_v11  ;;  %v2120_v5 = vmul.f32 %v5743_v21, %v5742_v54  ;;  %v5749_v11 = vld [vmem:[#allocation61_spill] sm:$0xff] }
 0x3f0   : > { %v2372_v38 = vadd.f32 %v2340_v30, %v2180_v25  ;;  %v1954_v30 = vmul.f32 %v4998_v29, %v1367_v17  ;;  %v2176_v25 = vadd.f32 %v2144_v22, %v1984_v18  ;;  %v5756_v22 = vld [vmem:[#allocation109_spill] sm:$0xff] }
 0x3f2   : > { %v1721_v43 = vpop.permute.xlu1 %1720  ;;  %v2480_v35 = vpack.c.bf16 %v2372_v38, %v2371_v45  ;;  %v2368_v40 = vadd.f32 %v2336_v20, %v2176_v25  ;;  %v5750_v45 = vpack.c.bf16 %v5748_v3, %v5749_v11  ;;  %v5751_v38 = vld [vmem:[#allocation65_spill] sm:$0xff]  ;;  %v2251_v25 = vpop.permute.xlu0 %2250  ;;  %v5785_v3 = vld [vmem:[#allocation64_spill] sm:$0xff] }
 0x3f3   : > { %v1762_v42 = vmul.f32 %v1721_v43, %v1365_v7  ;;  %v1735_v43 = vmul.f32 %v5752_v62, %v5751_v38 }
 0x3f4   : > { %2933 = vmatprep.subr.bf16.mxu1 %v2480_v35  ;;  %v1985_v35 = vadd.f32 %v1953_v12, %v1761_v10  ;;  %v2478_v32 = vpack.c.bf16 %v2368_v40, %v5147_v51  ;;  %v1927_v51 = vmul.f32 %v5739_v56, %v5738_v2  ;;  %v1960_v12 = vadd.f32 %v1928_v9, %v1736_v58  ;;  %v5757_v10 = vld [vmem:[#allocation101_spill] sm:$0xff]  ;;  %v5777_v56 = vld [vmem:[#allocation100_spill] sm:$0xff] }
 0x3f5   : > { %2934 = vmatpush3.bf16.msra.mxu1 %v5731_v4  ;;  %v1986_v63 = vadd.f32 %v1954_v30, %v1762_v42  ;;  %v5754_v4 = vld [vmem:[#allocation84_spill] sm:$0xff]  ;;  %v5755_v42 = vld [vmem:[#allocation77_spill] sm:$0xff]  ;;  %v2133_v30 = vmul.f32 %v5757_v10, %v5756_v22  ;;  %v1733_v9 = vmul.f32 %v5780_v33, %v5779_v13  ;;  %v2463_v33 = vld [vmem:[%s4326_s6 + $0x30] sm:$0xff] }
 0x3f6   : > { %v2177_v23 = vadd.f32 %v2145_v37, %v1985_v35  ;;  %v2119_v18 = vmul.f32 %v5754_v4, %v5753_v44  ;;  %v1959_v37 = vadd.f32 %v1927_v51, %v1735_v43  ;;  %v5776_v2 = vld [vmem:[#allocation89_spill] sm:$0xff]  ;;  %v5786_v43 = vld [vmem:[#allocation66_spill] sm:$0xff] }
 0x3f7   : > { %v2107_v48 = vpop.permute.xlu1 %2106  ;;  %v5778_v51 = vpack.c.bf16 %v5776_v2, %v5777_v56 }
 0x3f8   : > { %v2146_v8 = vmul.f32 %v2107_v48, %v1558_v15  ;;  %v1982_v15 = vadd.f32 %v1950_v55, %v1758_v6  ;;  %v2369_v61 = vadd.f32 %v2337_v0, %v2177_v23  ;;  %v5758_v55 = vld [vmem:[#allocation75_spill] sm:$0xff]  ;;  %v5759_v0 = vld [vmem:[#allocation105_spill] sm:$0xff]  ;;  %v5762_v6 = vld [vmem:[#allocation58_spill] sm:$0xff] }
 0x3f9   : > { %v5764_v23 = vld [vmem:[#allocation108_spill] sm:$0xff] }
 0x3fa   : > { %v2178_v53 = vadd.f32 %v2146_v8, %v1986_v63  ;;  %v2174_v60 = vadd.f32 %v2142_v27, %v1982_v15  ;;  %v2152_v8 = vadd.f32 %v2120_v5, %v1960_v12  ;;  %v5760_v63 = vld [vmem:[#allocation104_spill] sm:$0xff]  ;;  %v5763_v27 = vld [vmem:[#allocation98_spill] sm:$0xff] }
 0x3fb   : > { %v5761_v20 = vpack.c.bf16 %v5759_v0, %v5760_v63  ;;  %v5781_v5 = vld [vmem:[#allocation62_spill] sm:$0xff] }
 0x3fc   : > { %v2299_v31 = vpop.permute.xlu1 %2298  ;;  %v2366_v16 = vadd.f32 %v2334_v36, %v2174_v60  ;;  %v5766_v36 = vld [vmem:[#allocation115_spill] sm:$0xff] }
 0x3fd   : > { %v2338_v29 = vmul.f32 %v2299_v31, %v1560_v57 }
 0x3fe   : > { %v2477_v57 = vpack.c.bf16 %v2366_v16, %v5152_v59  ;;  %v5745_v59 = vld [vmem:[#allocation103_spill] sm:$0xff] }
 0x3ff   : > { %v2370_v34 = vadd.f32 %v2338_v29, %v2178_v53  ;;  %v5746_v52 = vpack.c.bf16 %v5744_v24, %v5745_v59  ;;  %v5765_v53 = vpack.c.bf16 %v5763_v27, %v5764_v23  ;;  %v2151_v29 = vadd.f32 %v2119_v18, %v1959_v37  ;;  %v5782_v24 = vld [vmem:[#allocation88_spill] sm:$0xff] }
 0x400   : > { %v2191_v17 = vpop.permute.xlu1 %2190  ;;  %v1734_v59 = vmul.f32 %v5782_v24, %v5781_v5  ;;  %v5788_v37 = vmov 1.0|1.0   ;;  %v2464_v24 = vld [vmem:[%s4326_s6 + $0x38] sm:$0xff] }
 0x401   : > { %v2479_v26 = vpack.c.bf16 %v2370_v34, %v2369_v61  ;;  %v2311_v35 = vmul.f32 %v2191_v17, %v5758_v55  ;;  %v2165_v61 = vadd.f32 %v2133_v30, %v5766_v36  ;;  %v5767_v34 = vld [vmem:[#allocation113_spill] sm:$0xff] }
 0x402   : > { %v2326_v60 = vmul.f32 %v2251_v25, %v5767_v34  ;;  %v2459_v34 = vld [vmem:[%s4326_s6 + $0x10] sm:$0xff] }
 0x403   : > { %2935 = vmatprep.subr.bf16.mxu1 %v2479_v26  ;;  %v5768_v26 = vld [vmem:[#allocation110_spill] sm:$0xff]  ;;  %v2343_v17 = vadd.f32 %v2311_v35, %v2151_v29 }
 0x404   : > { %v2195_v49 = vpop.permute.xlu1 %2194  ;;  %2936 = vmatpush3.bf16.msra.mxu1 %v5732_v28  ;;  %v2458_v29 = vld [vmem:[%s4326_s6 + $0x8] sm:$0xff] }
 0x405   : > { %2937 = vmatprep.subr.bf16.mxu1 %v2478_v32  ;;  %v2312_v48 = vmul.f32 %v2195_v49, %v5755_v42  ;;  %v5769_v32 = vld [vmem:[#allocation112_spill] sm:$0xff]  ;;  %v5770_v49 = vld [vmem:[#allocation55_spill] sm:$0xff] }
 0x406   : > { %v5771_v28 = vpack.c.bf16 %v5769_v32, %v5770_v49  ;;  %v5787_v42 = vld [vmem:[#allocation71_spill] sm:$0xff]  ;;  %v2460_v32 = vld [vmem:[%s4326_s6 + $0x18] sm:$0xff] }
 0x407   : > { %v2344_v40 = vadd.f32 %v2312_v48, %v2152_v8 }
 0x408   : > { %2938 = vmatpush3.bf16.msra.mxu1 %v5735_v50  ;;  %v5774_v50 = vld [vmem:[#allocation63_spill] sm:$0xff] }
 0x409   : > { %v2059_v1 = vpop.permute.xlu1 %2058  ;;  %2939 = vmatprep.subr.bf16.mxu1 %v2477_v57  ;;  %v5772_v57 = vld [vmem:[#allocation60_spill] sm:$0xff]  ;;  %v2466_v54 = vpack.c.bf16 %v2344_v40, %v2343_v17 }
 0x40a   : > { %v2134_v19 = vmul.f32 %v2059_v1, %v5747_v47  ;;  %v1925_v46 = vmul.f32 %v5773_v14, %v5772_v57  ;;  %v5775_v1 = vld [vmem:[#allocation93_spill] sm:$0xff]  ;;  %v5784_v47 = vld [vmem:[#allocation102_spill] sm:$0xff] }
 0x40b   : > { %v1926_v41 = vmul.f32 %v5775_v1, %v5774_v50 }
 0x40c   : > { %2940 = vmatpush3.bf16.msra.mxu1 %v5746_v52  ;;  %v2166_v31 = vadd.f32 %v2134_v19, %v5762_v6  ;;  %v5783_v52 = vld [vmem:[#allocation69_spill] sm:$0xff]  ;;  %v1957_v38 = vadd.f32 %v1925_v46, %v1733_v9 }
 0x40d   : > { %v1991_v7 = vpop.permute.xlu1 %1990  ;;  %2941 = vmatprep.subr.bf16.mxu1 %v5750_v45  ;;  %v2118_v19 = vmul.f32 %v5784_v47, %v5783_v52  ;;  %v1958_v62 = vadd.f32 %v1926_v41, %v1734_v59  ;;  %v2457_v6 = vld [vmem:[%s4326_s6] sm:$0xff] }
 0x40e   : > { %v2358_v39 = vadd.f32 %v2326_v60, %v2166_v31  ;;  %v2117_v11 = vmul.f32 %v1991_v7, %v5785_v3  ;;  %v2461_v46 = vld [vmem:[%s4326_s6 + $0x20] sm:$0xff] }
 0x40f   : > { %v2150_v18 = vadd.f32 %v2118_v19, %v1958_v62 }
 0x410   : > { %2942 = vmatpush3.bf16.msra.mxu1 %v5761_v20  ;;  %v2149_v12 = vadd.f32 %v2117_v11, %v1957_v38 }
 0x411   : > { %2943 = vmatprep.subr.bf16.mxu1 %v5765_v53 }
 0x412   : > { %v2247_v15 = vpop.permute.xlu1 %2246 }
 0x413   : > { %v2325_v16 = vmul.f32 %v2247_v15, %v5768_v26 }
 0x414   : > { %2944 = vmatpush3.bf16.msra.mxu1 %v5771_v28 }
 0x415   : > { %v2357_v58 = vadd.f32 %v2325_v16, %v2165_v61  ;;  %2945 = vmatprep.subr.bf16.mxu1 %v5778_v51 }
 0x416   : > { %v2183_v21 = vpop.permute.xlu1 %2182 }
 0x417   : > { %v2473_v45 = vpack.c.bf16 %v2358_v39, %v2357_v58  ;;  %v2309_v44 = vmul.f32 %v2183_v21, %v5786_v43  ;;  %v2462_v58 = vld [vmem:[%s4326_s6 + $0x28] sm:$0xff] }
 0x418   : > { %2946 = vmatpush3.bf16.msra.mxu1 %v2466_v54 }
 0x419   : > { %2947 = vmatprep.subr.bf16.mxu1 %v2473_v45  ;;  %v2341_v22 = vadd.f32 %v2309_v44, %v2149_v12 }
 0x41a   : > { %v2187_v4 = vpop.permute.xlu1 %2186 }
 0x41b   : > { %v2310_v48 = vmul.f32 %v2187_v4, %v5787_v42 }
 0x41d   : > { %v2342_v10 = vadd.f32 %v2310_v48, %v2150_v18 }
 0x41f   : > { %v2465_v30 = vpack.c.bf16 %v2342_v10, %v2341_v22 }
 0x421   : > { %2948 = vmatpush3.bf16.msra.mxu1 %v2465_v30 }
 0x424   : > { %2885 = vmatmul.mubr.msk.bf16.vlgmr.msra.gmra.mxu1 %vm5123_vm5, %v5788_v37 }
 0x425   : > { %2887 = vmatprep.mubr.msk.bf16.mxu1 %vm5135_vm9, %v5788_v37 }
 0x42c   : > { %2889 = vmatmul.mubr.msk.bf16.gmra.mxu1 %vm5139_vm11, %v5788_v37 }
 0x42d   : > { %2891 = vmatprep.mubr.msk.bf16.mxu1 %vm5154_vm0, %v5788_v37 }
 0x434   : > { %2893 = vmatmul.mubr.msk.bf16.gmra.mxu1 %vm5158_vm1, %v5788_v37 }
 0x435   : > { %2895 = vmatprep.mubr.msk.bf16.mxu1 %vm5168_vm4, %v5788_v37 }
 0x43c   : > { %2897 = vmatmul.mubr.msk.bf16.gmra.mxu1 %vm5172_vm8, %v5788_v37 }
 0x4e4   : > { %v2949_v20 = vpop.f32.mrf.mxu1 }
 0x4e6   : > { %v2950_v31 = vpop.f32.mrf.mxu1 }
 0x4e7   : > { %v2951_v27 = vadd.f32 %v2950_v31, %v2949_v20 }
 0x4e8   : > { %v2952_v23 = vpop.f32.mrf.mxu1 }
 0x4e9   : > { %v2546_v53 = vadd.f32 %v2951_v27, %v2457_v6 }
 0x4ea   : > { %v2953_v40 = vpop.f32.mrf.mxu1 }
 0x4eb   : > { %2554 = vst [vmem:[%s4326_s6] sm:$0xff] %v2546_v53  ;;  %v2954_v15 = vadd.f32 %v2953_v40, %v2952_v23 }
 0x4ec   : > { %v2955_v36 = vpop.f32.mrf.mxu1 }
 0x4ed   : > { %v2547_v61 = vadd.f32 %v2954_v15, %v2458_v29 }
 0x4ee   : > { %v2956_v60 = vpop.f32.mrf.mxu1 }
 0x4ef   : > { %2555 = vst [vmem:[%s4326_s6 + $0x8] sm:$0xff] %v2547_v61  ;;  %v2957_v26 = vadd.f32 %v2956_v60, %v2955_v36 }
 0x4f0   : > { %v2958_v16 = vpop.f32.mrf.mxu1 }
 0x4f1   : > { %v2548_v17 = vadd.f32 %v2957_v26, %v2459_v34 }
 0x4f2   : > { %v2959_v49 = vpop.f32.mrf.mxu1 }
 0x4f3   : > { %2556 = vst [vmem:[%s4326_s6 + $0x10] sm:$0xff] %v2548_v17  ;;  %v2960_v28 = vadd.f32 %v2959_v49, %v2958_v16 }
 0x4f4   : > { %v2961_v57 = vpop.f32.mrf.mxu1 }
 0x4f5   : > { %v2549_v14 = vadd.f32 %v2960_v28, %v2460_v32 }
 0x4f6   : > { %v2962_v50 = vpop.f32.mrf.mxu1 }
 0x4f7   : > { %2557 = vst [vmem:[%s4326_s6 + $0x18] sm:$0xff] %v2549_v14  ;;  %v2963_v1 = vadd.f32 %v2962_v50, %v2961_v57 }
 0x4f8   : > { %v2964_v41 = vpop.f32.mrf.mxu1 }
 0x4f9   : > { %v2550_v39 = vadd.f32 %v2963_v1, %v2461_v46 }
 0x4fa   : > { %v2965_v2 = vpop.f32.mrf.mxu1 }
 0x4fb   : > { %2558 = vst [vmem:[%s4326_s6 + $0x20] sm:$0xff] %v2550_v39  ;;  %v2966_v56 = vadd.f32 %v2965_v2, %v2964_v41 }
 0x4fc   : > { %v2967_v51 = vpop.f32.mrf.mxu1 }
 0x4fd   : > { %v2551_v13 = vadd.f32 %v2966_v56, %v2462_v58 }
 0x4fe   : > { %v2968_v9 = vpop.f32.mrf.mxu1 }
 0x4ff   : > { %2559 = vst [vmem:[%s4326_s6 + $0x28] sm:$0xff] %v2551_v13  ;;  %v2969_v54 = vadd.f32 %v2968_v9, %v2967_v51 }
 0x500   : > { %v2970_v21 = vpop.f32.mrf.mxu1 }
 0x501   : > { %v2552_v5 = vadd.f32 %v2969_v54, %v2463_v33 }
 0x502   : > { %v2971_v59 = vpop.f32.mrf.mxu1 }
 0x503   : > { %2560 = vst [vmem:[%s4326_s6 + $0x30] sm:$0xff] %v2552_v5  ;;  %v2972_v52 = vadd.f32 %v2971_v59, %v2970_v21 }
 0x505   : > { %v2553_v47 = vadd.f32 %v2972_v52, %v2464_v24 }
 0x507   : > { %2561 = vst [vmem:[%s4326_s6 + $0x38] sm:$0xff] %v2553_v47 }
 0x508 PF: > { %s5796_s28 = sld [smem:[#allocation42_spill]] }
 0x50e   : > { %p2898_p6 = scmp.ne.s32.totalorder %s5796_s28, 2 }
 0x50f   : > { %s5797_s14 = sld [smem:[#allocation123_spill]] (!%p2898_p6) }
 0x510   : > { %2565 = sbr.rel (%p2898_p6) target bundleno = 1308 (0x51c), region = 76 }
 0x515   : > { %v2566_v19 = vld [vmem:[%s4326_s6] sm:$0xff]  ;;  %v2899_v3 = vld [vmem:[%s5797_s14] ss:$0 sm:$0xff]  ;;  %v2567_v11 = vld [vmem:[%s4326_s6 + $0x8] sm:$0xff] }
 0x516   : > { %v2581_v45 = vadd.f32 %v2899_v3, %v2566_v19  ;;  %v2582_v38 = vadd.f32 %v2899_v3, %v2567_v11  ;;  %v2568_v62 = vld [vmem:[%s4326_s6 + $0x10] sm:$0xff]  ;;  %v2569_v43 = vld [vmem:[%s4326_s6 + $0x18] sm:$0xff]  ;;  %v2570_v44 = vld [vmem:[%s4326_s6 + $0x20] sm:$0xff] }
 0x517   : > { %v2583_v4 = vadd.f32 %v2899_v3, %v2568_v62  ;;  %v2584_v18 = vadd.f32 %v2899_v3, %v2569_v43  ;;  %v2585_v12 = vadd.f32 %v2899_v3, %v2570_v44  ;;  %v2571_v42 = vld [vmem:[%s4326_s6 + $0x28] sm:$0xff]  ;;  %v2572_v48 = vld [vmem:[%s4326_s6 + $0x30] sm:$0xff]  ;;  %v2573_v22 = vld [vmem:[%s4326_s6 + $0x38] sm:$0xff] }
 0x518   : > { %2589 = vst [vmem:[%s4326_s6] sm:$0xff] %v2581_v45  ;;  %2590 = vst [vmem:[%s4326_s6 + $0x8] sm:$0xff] %v2582_v38  ;;  %v2586_v10 = vadd.f32 %v2899_v3, %v2571_v42  ;;  %v2587_v30 = vadd.f32 %v2899_v3, %v2572_v48  ;;  %v2588_v37 = vadd.f32 %v2899_v3, %v2573_v22 }
 0x519   : > { %2591 = vst [vmem:[%s4326_s6 + $0x10] sm:$0xff] %v2583_v4  ;;  %2592 = vst [vmem:[%s4326_s6 + $0x18] sm:$0xff] %v2584_v18 }
 0x51a   : > { %2593 = vst [vmem:[%s4326_s6 + $0x20] sm:$0xff] %v2585_v12  ;;  %2594 = vst [vmem:[%s4326_s6 + $0x28] sm:$0xff] %v2586_v10 }
 0x51b   : > { %2595 = vst [vmem:[%s4326_s6 + $0x30] sm:$0xff] %v2587_v30  ;;  %2596 = vst [vmem:[%s4326_s6 + $0x38] sm:$0xff] %v2588_v37 }
 0x51c PF: > { %s5798_s29 = sld [smem:[#allocation43_spill]]  ;;  %s2611_s30 = sshll.u32 %s4326_s6, 4  ;;  %s5322_s30 = int_to_ptr.vmem [resolvable:$true] %s2611_s30 }
 0x51d   : > { %s5800_s19 = sld [smem:[#allocation45_spill]]  ;;  %s5326_s5 = scalar_lea.sflag [#allocation7], %s465_s1 }
 0x51e   : > { %s5801_s17 = sld [smem:[#allocation124_spill]]  ;;  %s3580_s18 = scalar_lea.vmem %s5322_s30, 1024 }
 0x51f   : > { %p3581_p7 = scmp.ne.s32.totalorder %s5322_s30, %s3580_s18  ;;  %s3781_s8 = smov [#allocation14]  }
 0x520   : > { %s3584_s15 = sshll.u32 %s3781_s8, 4  ;;  %s3585_s15 = int_to_ptr.vmem [resolvable:$false] %s3584_s15 }
 0x521   : > { %s3586_s0 = scalar_lea.vmem %s3585_s15, 2048  ;;  %p3587_p0 = scmp.lt.s32.totalorder %s5322_s30, %s3585_s15 }
 0x522   : > { %s2908_s20 = sshll.u32 %s5798_s29, 10  ;;  %p3588_p3 = scmp.lt.s32.totalorder %s3586_s0, %s3580_s18 }
 0x523   : > { %p5803_p13 = scmp.ne.s32.totalorder %s5800_s19, 0 }
 0x524   : > { %s5802_s4 = smov %s5801_s17  ;;  %s5319_s24 = scalar_lea.hbm %s5801_s17, %s2908_s20 }
 0x525   : > { %p3582_p5 = pnand %p3581_p7, %p5803_p13  ;;  %p3589_p9 = por %p3588_p3, %p3587_p0 }
 0x527   : > { %p3583_p2 = pneg %p3582_p5 }
 0x529   : > { %p3590_p4 = pnand %p3589_p9, %p3583_p2 }
 0x52b   : > { %3593 = shalt.err (!%p3590_p4)
}
 0x52c   : > { %s3594_s1 = scalar_lea.hbm %s5319_s24, 1024  ;;  %s3598_s22 = scalar_lea.hbm %s5802_s4, 2048 }
 0x52d   : > { %p3595_p1 = scmp.ne.s32.totalorder %s5319_s24, %s3594_s1  ;;  %p3599_p11 = scmp.lt.s32.totalorder %s5319_s24, %s5802_s4 }
 0x52e   : > { %p3600_p10 = scmp.lt.s32.totalorder %s3598_s22, %s3594_s1 }
 0x52f   : > { %p3596_p12 = pnand %p3595_p1, %p5803_p13 }
 0x530   : > { %p3601_p6 = por %p3600_p10, %p3599_p11 }
 0x531   : > { %p3597_p8 = pneg %p3596_p12 }
 0x533   : > { %p3602_p7 = pnand %p3601_p6, %p3597_p8 }
 0x535   : > { %3605 = shalt.err (!%p3602_p7)
}
 0x536   : > { %s3782_s9 = smov 128   ;;  %s3783_s14 = smov 8  }
 0x537   : > { %3047 = dma.vmem_to_hbm [thread:$0]  (%p5803_p13), %s5322_s30, 1024, %s5319_s24, %s5326_s5, %s3782_s9, %s3782_s9, %s3783_s14  }
 0x538 PF: > { %s5804_s29 = sld [smem:[#allocation33_spill]]  ;;  %p3087_p5 = scmp.ge.s32.totalorder %s3762_s27, 2 }
 0x539   : > { %s5805_s13 = sld [smem:[#allocation47_spill]] }
 0x53e   : > { %s2626_s20 = sand.u32 1, %s5804_s29  }
 0x53f   : > { %p5806_p2 = scmp.ne.s32.totalorder %s5805_s13, 0  ;;  %s2627_s7 = scalar_lea.sflag [#allocation7], %s2626_s20 }
 0x541   : > { %p3079_p0 = pnand %p3087_p5, %p5806_p2 }
 0x543   : > { %p3080_p3 = pneg %p3079_p0 }
 0x545   : > { %3693 = dma.done.wait (%p3080_p3), %s2627_s7, 1024  }
 0x546   : > { %3695 = vsyncadd (%p3080_p3), %s2627_s7, 4294966272  ;;  %s36_s27 = sadd.s32 1, %s3762_s27   ;;  %s5808_s0 = sld [smem:[#allocation34_spill]] }
 0x547   : > { %p5354_p9 = scmp.ge.s32.totalorder %s36_s27, 8   ;;  %s5809_s1 = sld [smem:[#allocation35_spill]] }
 0x548   : > { %s5810_s13 = sld [smem:[#allocation49_spill]]  ;;  %s5818_s30 = smov %s5832_s23 }
 0x549   : > { %s5811_s14 = sld [smem:[#allocation37_spill]]  ;;  %s5820_s16 = smov %s4265_s2 }
 0x54a   : > { %s5812_s15 = sld [smem:[#allocation38_spill]]  ;;  %s5821_s20 = smov %s3738_s21 }
 0x54b   : > { %s5813_s17 = sld [smem:[#allocation39_spill]]  ;;  %s5823_s23 = smov %s3754_s25 }
 0x54c   : > { %s5814_s18 = sld [smem:[#allocation40_spill]]  ;;  %s5825_s25 = smov %s5818_s30 }
 0x54d   : > { %s5815_s19 = sld [smem:[#allocation51_spill]] }
 0x54e   : > { %s5816_s24 = sld [smem:[#allocation41_spill]] }
 0x54f   : > { %s5817_s22 = sld [smem:[#allocation52_spill]] }
 0x550   : > { %s5819_s5 = sld [smem:[#allocation46_spill]] }
 0x552   :  { %35 = sbr.rel (!%p5354_p9) target bundleno = 32 (0x20), region = 133 }
 0x554   : > { %s5822_s21 = smov %s5816_s24  ;;  %s5824_s24 = smov %s3758_s26 }
 0x556   : > { %s5826_s26 = smov %s5819_s5 }
 0x557   :  { %2632 = vsyncpa [#allocation6], 1 }
 0x558   :  { %2634 = vsyncpa [#allocation6 + $0x1], 1 }
 0x559   :  { %2635 = vsyncpa [#allocation9], 1 }
 0x55a   :  { %2637 = vsyncpa [#allocation9 + $0x1], 1 }
 0x55b   :  { %2638 = vsyncpa [#allocation12], 1 }
 0x55c   :  { %2639 = vsyncpa [#allocation7], 1 }
 0x55d   :  { %2641 = vsyncpa [#allocation7 + $0x1], 1 }

</bundles_post_ra>
